<compile_context>
chip_gen: v7x
topology: tpu7x:2x2x1
jax: 0.10.0
libtpu: 0.0.40
codegen_flags: <defaults>
</compile_context>

<pallas_src>
import jax
import jax.numpy as jnp
from jax.experimental import pallas as pl
from jax.experimental.pallas import tpu as pltpu


def _dwconv3x3_f32(x, w):
    """Depthwise 3x3 'same' conv on one (H, W, CB) tile; f32 accumulation.

    x: (H, W, CB) float tile, w: (3, 3, CB) per-channel taps.
    The kh taps are leading-axis slices of a once H-padded copy (cheap, no
    (8,128) relayout); only the +/-1 column taps need a sublane (W) shift, so
    just two sublane-shift materializations total.
    """
    H, W, CB = x.shape
    xf = x.astype(jnp.float32)
    wf = w.astype(jnp.float32)

    zrow = jnp.zeros((1, W, CB), jnp.float32)
    xp = jnp.concatenate([zrow, xf, zrow], axis=0)            # (H+2, W, CB)

    def hconv(kw):
        # 1-D conv along H with kernel column kw (leading-axis slices only).
        return (xp[0:H] * wf[0, kw][None, None, :]
                + xp[1:H + 1] * wf[1, kw][None, None, :]
                + xp[2:H + 2] * wf[2, kw][None, None, :])

    c0, c1, c2 = hconv(0), hconv(1), hconv(2)
    zcol = jnp.zeros((H, 1, CB), jnp.float32)
    left = jnp.concatenate([zcol, c0[:, :-1, :]], axis=1)     # tap at w-1
    right = jnp.concatenate([c2[:, 1:, :], zcol], axis=1)     # tap at w+1
    return left + c1 + right


def rpe_stats_kernel(x_ref, w_ref, stats_ref):
    # x_ref: (H, W, CB) input tile; w_ref: (3, 3, CB); stats_ref: (2, CB)
    conv = _dwconv3x3_f32(x_ref[...], w_ref[...])             # (H, W, CB) f32
    s = jnp.sum(conv, axis=(0, 1), keepdims=True)             # (1, 1, CB)
    ss = jnp.sum(conv * conv, axis=(0, 1), keepdims=True)     # (1, 1, CB)
    stats_ref[...] = jnp.concatenate([s[0], ss[0]], axis=0)   # (2, CB)


def rpe_apply_kernel(x_ref, w_ref, scale_ref, shift_ref, o_ref):
    # Recompute the cheap conv (avoids an HBM round trip of the f32 intermediate),
    # apply the already-reduced BN affine, add residual.
    x = x_ref[...]                                            # (H, W, CB)
    conv = _dwconv3x3_f32(x, w_ref[...])
    scale = scale_ref[...].reshape(1, 1, -1)                  # (1, 1, CB)
    shift = shift_ref[...].reshape(1, 1, -1)
    y = conv * scale + shift
    o_ref[...] = (x.astype(jnp.float32) + y).astype(o_ref.dtype)


def _pick_channel_block(c):
    # Lane-dense 128-multiple channel blocks when possible; otherwise one block.
    # (For C < 128 -- e.g. the demo dim=4 -- lanes are underutilized; production
    # swin dims (>=96) are fine.  H, W stay whole per tile: swin-unet RPE feature
    # maps are small enough that H*W*CB comfortably fits VMEM.)
    for cb in (512, 256, 128):
        if c % cb == 0:
            return cb
    return c


def _vmem_limit_bytes(h, w, cb, in_itemsize, out_itemsize):
    tile = h * w * cb
    est = 2 * tile * (in_itemsize + out_itemsize)   # double-buffered in/out tiles
    est += 10 * tile * 4                            # f32 conv temporaries
    est += 4 << 20                                  # params + headroom
    # Keep below v7x's 64 MiB physical VMEM (and above the 32 MiB scoped default).
    return int(min(max(est, 16 << 20), 48 << 20))


def rpe_forward_nhwc(x_nhwc, weight, bias, gamma, beta, eps=1e-5):
    """NHWC entry point (preferred in production: no layout transposes).

    x_nhwc: (N, H, W, C); weight: (C, 1, 3, 3); bias/gamma/beta: (C,).
    """
    N, H, W, C = x_nhwc.shape
    CB = _pick_channel_block(C)
    num_cb = C // CB

    w3 = jnp.transpose(weight[:, 0, :, :], (1, 2, 0))         # (C,3,3) -> (3,3,C)
    # Conv bias is exactly cancelled by the BN mean subtraction -> not used.
    del bias

    grid = (num_cb, N)
    vmem_limit = _vmem_limit_bytes(H, W, CB, x_nhwc.dtype.itemsize,
                                   x_nhwc.dtype.itemsize)

    # ---- Phase 1: per-(channel-block, sample) partial sum / sum-of-squares ----
    stats = pl.pallas_call(
        rpe_stats_kernel,
        out_shape=jax.ShapeDtypeStruct((num_cb, N, 2, CB), jnp.float32),
        grid_spec=pltpu.PrefetchScalarGridSpec(
            num_scalar_prefetch=0,
            grid=grid,
            in_specs=[
                pl.BlockSpec((None, H, W, CB), lambda c, n: (n, 0, 0, c)),
                pl.BlockSpec((3, 3, CB), lambda c, n: (0, 0, c)),
            ],
            out_specs=pl.BlockSpec((None, None, 2, CB),
                                   lambda c, n: (c, n, 0, 0)),
        ),
        compiler_params=pltpu.CompilerParams(
            dimension_semantics=("parallel", "parallel"),
            vmem_limit_bytes=vmem_limit),
    )(x_nhwc, w3)

    # ---- Tiny (C,)-sized BN finalize in plain JAX (negligible cost) ----
    total = float(N * H * W)
    sum_c = jnp.sum(stats[:, :, 0, :], axis=1).reshape(C)     # per-channel sums
    sumsq_c = jnp.sum(stats[:, :, 1, :], axis=1).reshape(C)
    mean = sum_c / total
    var = jnp.maximum(sumsq_c / total - mean * mean, 0.0)     # biased variance
    inv = jax.lax.rsqrt(var + eps)
    g32 = gamma.astype(jnp.float32)
    b32 = beta.astype(jnp.float32)
    scale = (g32 * inv).reshape(1, C)
    shift = (b32 - mean * g32 * inv).reshape(1, C)
    # TODO(synk): BatchNorm running_mean/running_var momentum update is a
    # training-only side effect with no influence on the forward output; not
    # materialized here.

    # ---- Phase 2: normalize + residual add ----
    out = pl.pallas_call(
        rpe_apply_kernel,
        out_shape=jax.ShapeDtypeStruct((N, H, W, C), x_nhwc.dtype),
        grid_spec=pltpu.PrefetchScalarGridSpec(
            num_scalar_prefetch=0,
            grid=grid,
            in_specs=[
                pl.BlockSpec((None, H, W, CB), lambda c, n: (n, 0, 0, c)),
                pl.BlockSpec((3, 3, CB), lambda c, n: (0, 0, c)),
                pl.BlockSpec((1, CB), lambda c, n: (0, c)),
                pl.BlockSpec((1, CB), lambda c, n: (0, c)),
            ],
            out_specs=pl.BlockSpec((None, H, W, CB),
                                   lambda c, n: (n, 0, 0, c)),
        ),
        compiler_params=pltpu.CompilerParams(
            dimension_semantics=("parallel", "parallel"),
            vmem_limit_bytes=vmem_limit),
    )(x_nhwc, w3, scale, shift)
    return out


def rpe_forward(x_nchw, weight, bias, gamma, beta, eps=1e-5):
    """PyTorch-parity entry point (NCHW).

    The transposes below are extra HBM passes; production callers should keep
    NHWC at the module boundary and call rpe_forward_nhwc directly.
    """
    x = jnp.transpose(x_nchw, (0, 2, 3, 1))                   # NCHW -> NHWC
    out = rpe_forward_nhwc(x, weight, bias, gamma, beta, eps)
    return jnp.transpose(out, (0, 3, 1, 2))                   # NHWC -> NCHW


def rpe_reference(x_nchw, weight, bias, gamma, beta, eps=1e-5):
    """Pure-JAX reference mirroring the PyTorch module (training-mode BN)."""
    C = x_nchw.shape[1]
    conv = jax.lax.conv_general_dilated(
        x_nchw, weight,
        window_strides=(1, 1), padding=((1, 1), (1, 1)),
        feature_group_count=C,
        dimension_numbers=("NCHW", "OIHW", "NCHW"),
    ) + bias[None, :, None, None]
    mean = conv.mean(axis=(0, 2, 3), keepdims=True)
    var = ((conv - mean) ** 2).mean(axis=(0, 2, 3), keepdims=True)
    y = (conv - mean) * jax.lax.rsqrt(var + eps)
    y = y * gamma[None, :, None, None] + beta[None, :, None, None]
    return x_nchw + y


if __name__ == "__main__":
    key = jax.random.PRNGKey(0)

    def run_case(case_key, n, c, h, w):
        k_x, k_w, k_b, k_g, k_be = jax.random.split(case_key, 5)
        x = jax.random.normal(k_x, (n, c, h, w), dtype=jnp.float32)
        # Parameters of RPE(dim=c): Conv2d(c, c, 3, padding=1, groups=c) + BatchNorm2d(c)
        weight = jax.random.normal(k_w, (c, 1, 3, 3), dtype=jnp.float32) * 0.2
        bias = jax.random.normal(k_b, (c,), dtype=jnp.float32) * 0.1
        gamma = 1.0 + 0.1 * jax.random.normal(k_g, (c,), dtype=jnp.float32)
        beta = 0.1 * jax.random.normal(k_be, (c,), dtype=jnp.float32)

        out = jax.block_until_ready(rpe_forward(x, weight, bias, gamma, beta))
        ref = jax.block_until_ready(rpe_reference(x, weight, bias, gamma, beta))

        assert out.shape == (n, c, h, w)
        assert jnp.allclose(out, ref, atol=1e-4, rtol=1e-4), \
            f"mismatch vs reference for shape {(n, c, h, w)}"

    k0, k1 = jax.random.split(key)
    run_case(k0, 2, 4, 16, 16)     # module-spec demo size (batch=2, dim=4, spatial=16)
    run_case(k1, 1, 256, 8, 8)     # exercises lane-dense 128-channel blocking
    print("KERNEL_OK")
</pallas_src>

<mosaic_0001>
module attributes {stable_mosaic.version = 11 : i64} {
  func.func @rpe_stats_kernel(%arg0: i32, %arg1: i32, %arg2: memref<1x16x16x4xf32, #tpu.memory_space<vmem>>, %arg3: memref<3x3x4xf32, #tpu.memory_space<vmem>>, %arg4: memref<1x1x2x4xf32, #tpu.memory_space<vmem>>) attributes {dimension_semantics = [#tpu.dimension_semantics<parallel>, #tpu.dimension_semantics<parallel>], iteration_bounds = array<i64: 1, 2>, scalar_prefetch = 0 : i64, scratch_operands = 0 : i64, tpu.core_type = #tpu.core_type<tc>, window_params = [{transform_indices = @transform_0, window_bounds = array<i64: 1, 16, 16, 4>}, {transform_indices = @transform_1, window_bounds = array<i64: 3, 3, 4>}, {transform_indices = @transform_2, window_bounds = array<i64: 1, 1, 2, 4>}]} {
    %c0 = arith.constant 0 : index
    %c0_0 = arith.constant 0 : index
    %c0_1 = arith.constant 0 : index
    %c0_2 = arith.constant 0 : index
    %0 = vector.load %arg2[%c0, %c0_0, %c0_1, %c0_2] : memref<1x16x16x4xf32, #tpu.memory_space<vmem>>, vector<1x16x16x4xf32>
    %1 = vector.shape_cast %0 : vector<1x16x16x4xf32> to vector<16x16x4xf32>
    %c0_3 = arith.constant 0 : index
    %c0_4 = arith.constant 0 : index
    %c0_5 = arith.constant 0 : index
    %2 = vector.load %arg3[%c0_3, %c0_4, %c0_5] : memref<3x3x4xf32, #tpu.memory_space<vmem>>, vector<3x3x4xf32>
    %cst = arith.constant 0.000000e+00 : f32
    %3 = vector.broadcast %cst : f32 to vector<1x16x4xf32>
    %4 = tpu.concatenate %3, %1, %3 in 0 : vector<1x16x4xf32>, vector<16x16x4xf32>, vector<1x16x4xf32> -> vector<18x16x4xf32>
    %5 = vector.extract_strided_slice %4 {offsets = [0, 0, 0], sizes = [16, 16, 4], strides = [1, 1, 1]} : vector<18x16x4xf32> to vector<16x16x4xf32>
    %6 = vector.extract_strided_slice %2 {offsets = [0, 0, 0], sizes = [1, 1, 4], strides = [1, 1, 1]} : vector<3x3x4xf32> to vector<1x1x4xf32>
    %7 = vector.shape_cast %6 : vector<1x1x4xf32> to vector<4xf32>
    %8 = vector.shape_cast %7 : vector<4xf32> to vector<1x1x4xf32>
    %9 = vector.broadcast %8 : vector<1x1x4xf32> to vector<16x16x4xf32>
    %10 = arith.mulf %5, %9 : vector<16x16x4xf32>
    %11 = vector.extract_strided_slice %4 {offsets = [1, 0, 0], sizes = [16, 16, 4], strides = [1, 1, 1]} : vector<18x16x4xf32> to vector<16x16x4xf32>
    %12 = vector.extract_strided_slice %2 {offsets = [1, 0, 0], sizes = [1, 1, 4], strides = [1, 1, 1]} : vector<3x3x4xf32> to vector<1x1x4xf32>
    %13 = vector.shape_cast %12 : vector<1x1x4xf32> to vector<4xf32>
    %14 = vector.shape_cast %13 : vector<4xf32> to vector<1x1x4xf32>
    %15 = vector.broadcast %14 : vector<1x1x4xf32> to vector<16x16x4xf32>
    %16 = arith.mulf %11, %15 : vector<16x16x4xf32>
    %17 = arith.addf %10, %16 : vector<16x16x4xf32>
    %18 = vector.extract_strided_slice %4 {offsets = [2, 0, 0], sizes = [16, 16, 4], strides = [1, 1, 1]} : vector<18x16x4xf32> to vector<16x16x4xf32>
    %19 = vector.extract_strided_slice %2 {offsets = [2, 0, 0], sizes = [1, 1, 4], strides = [1, 1, 1]} : vector<3x3x4xf32> to vector<1x1x4xf32>
    %20 = vector.shape_cast %19 : vector<1x1x4xf32> to vector<4xf32>
    %21 = vector.shape_cast %20 : vector<4xf32> to vector<1x1x4xf32>
    %22 = vector.broadcast %21 : vector<1x1x4xf32> to vector<16x16x4xf32>
    %23 = arith.mulf %18, %22 : vector<16x16x4xf32>
    %24 = arith.addf %17, %23 : vector<16x16x4xf32>
    %25 = vector.extract_strided_slice %4 {offsets = [0, 0, 0], sizes = [16, 16, 4], strides = [1, 1, 1]} : vector<18x16x4xf32> to vector<16x16x4xf32>
    %26 = vector.extract_strided_slice %2 {offsets = [0, 1, 0], sizes = [1, 1, 4], strides = [1, 1, 1]} : vector<3x3x4xf32> to vector<1x1x4xf32>
    %27 = vector.shape_cast %26 : vector<1x1x4xf32> to vector<4xf32>
    %28 = vector.shape_cast %27 : vector<4xf32> to vector<1x1x4xf32>
    %29 = vector.broadcast %28 : vector<1x1x4xf32> to vector<16x16x4xf32>
    %30 = arith.mulf %25, %29 : vector<16x16x4xf32>
    %31 = vector.extract_strided_slice %4 {offsets = [1, 0, 0], sizes = [16, 16, 4], strides = [1, 1, 1]} : vector<18x16x4xf32> to vector<16x16x4xf32>
    %32 = vector.extract_strided_slice %2 {offsets = [1, 1, 0], sizes = [1, 1, 4], strides = [1, 1, 1]} : vector<3x3x4xf32> to vector<1x1x4xf32>
    %33 = vector.shape_cast %32 : vector<1x1x4xf32> to vector<4xf32>
    %34 = vector.shape_cast %33 : vector<4xf32> to vector<1x1x4xf32>
    %35 = vector.broadcast %34 : vector<1x1x4xf32> to vector<16x16x4xf32>
    %36 = arith.mulf %31, %35 : vector<16x16x4xf32>
    %37 = arith.addf %30, %36 : vector<16x16x4xf32>
    %38 = vector.extract_strided_slice %4 {offsets = [2, 0, 0], sizes = [16, 16, 4], strides = [1, 1, 1]} : vector<18x16x4xf32> to vector<16x16x4xf32>
    %39 = vector.extract_strided_slice %2 {offsets = [2, 1, 0], sizes = [1, 1, 4], strides = [1, 1, 1]} : vector<3x3x4xf32> to vector<1x1x4xf32>
    %40 = vector.shape_cast %39 : vector<1x1x4xf32> to vector<4xf32>
    %41 = vector.shape_cast %40 : vector<4xf32> to vector<1x1x4xf32>
    %42 = vector.broadcast %41 : vector<1x1x4xf32> to vector<16x16x4xf32>
    %43 = arith.mulf %38, %42 : vector<16x16x4xf32>
    %44 = arith.addf %37, %43 : vector<16x16x4xf32>
    %45 = vector.extract_strided_slice %4 {offsets = [0, 0, 0], sizes = [16, 16, 4], strides = [1, 1, 1]} : vector<18x16x4xf32> to vector<16x16x4xf32>
    %46 = vector.extract_strided_slice %2 {offsets = [0, 2, 0], sizes = [1, 1, 4], strides = [1, 1, 1]} : vector<3x3x4xf32> to vector<1x1x4xf32>
    %47 = vector.shape_cast %46 : vector<1x1x4xf32> to vector<4xf32>
    %48 = vector.shape_cast %47 : vector<4xf32> to vector<1x1x4xf32>
    %49 = vector.broadcast %48 : vector<1x1x4xf32> to vector<16x16x4xf32>
    %50 = arith.mulf %45, %49 : vector<16x16x4xf32>
    %51 = vector.extract_strided_slice %4 {offsets = [1, 0, 0], sizes = [16, 16, 4], strides = [1, 1, 1]} : vector<18x16x4xf32> to vector<16x16x4xf32>
    %52 = vector.extract_strided_slice %2 {offsets = [1, 2, 0], sizes = [1, 1, 4], strides = [1, 1, 1]} : vector<3x3x4xf32> to vector<1x1x4xf32>
    %53 = vector.shape_cast %52 : vector<1x1x4xf32> to vector<4xf32>
    %54 = vector.shape_cast %53 : vector<4xf32> to vector<1x1x4xf32>
    %55 = vector.broadcast %54 : vector<1x1x4xf32> to vector<16x16x4xf32>
    %56 = arith.mulf %51, %55 : vector<16x16x4xf32>
    %57 = arith.addf %50, %56 : vector<16x16x4xf32>
    %58 = vector.extract_strided_slice %4 {offsets = [2, 0, 0], sizes = [16, 16, 4], strides = [1, 1, 1]} : vector<18x16x4xf32> to vector<16x16x4xf32>
    %59 = vector.extract_strided_slice %2 {offsets = [2, 2, 0], sizes = [1, 1, 4], strides = [1, 1, 1]} : vector<3x3x4xf32> to vector<1x1x4xf32>
    %60 = vector.shape_cast %59 : vector<1x1x4xf32> to vector<4xf32>
    %61 = vector.shape_cast %60 : vector<4xf32> to vector<1x1x4xf32>
    %62 = vector.broadcast %61 : vector<1x1x4xf32> to vector<16x16x4xf32>
    %63 = arith.mulf %58, %62 : vector<16x16x4xf32>
    %64 = arith.addf %57, %63 : vector<16x16x4xf32>
    %cst_6 = arith.constant 0.000000e+00 : f32
    %65 = vector.broadcast %cst_6 : f32 to vector<16x1x4xf32>
    %66 = vector.extract_strided_slice %24 {offsets = [0, 0, 0], sizes = [16, 15, 4], strides = [1, 1, 1]} : vector<16x16x4xf32> to vector<16x15x4xf32>
    %67 = tpu.concatenate %65, %66 in 1 : vector<16x1x4xf32>, vector<16x15x4xf32> -> vector<16x16x4xf32>
    %68 = vector.extract_strided_slice %64 {offsets = [0, 1, 0], sizes = [16, 15, 4], strides = [1, 1, 1]} : vector<16x16x4xf32> to vector<16x15x4xf32>
    %69 = tpu.concatenate %68, %65 in 1 : vector<16x15x4xf32>, vector<16x1x4xf32> -> vector<16x16x4xf32>
    %70 = arith.addf %67, %44 : vector<16x16x4xf32>
    %71 = arith.addf %70, %69 : vector<16x16x4xf32>
    %cst_7 = arith.constant dense<0.000000e+00> : vector<4xf32>
    %72 = vector.multi_reduction <add>, %71, %cst_7 [0, 1] : vector<16x16x4xf32> to vector<4xf32>
    %73 = vector.shape_cast %72 : vector<4xf32> to vector<1x1x4xf32>
    %74 = arith.mulf %71, %71 : vector<16x16x4xf32>
    %cst_8 = arith.constant dense<0.000000e+00> : vector<4xf32>
    %75 = vector.multi_reduction <add>, %74, %cst_8 [0, 1] : vector<16x16x4xf32> to vector<4xf32>
    %76 = vector.shape_cast %75 : vector<4xf32> to vector<1x1x4xf32>
    %77 = vector.shape_cast %73 : vector<1x1x4xf32> to vector<1x4xf32>
    %78 = vector.shape_cast %76 : vector<1x1x4xf32> to vector<1x4xf32>
    %79 = tpu.concatenate %77, %78 in 0 : vector<1x4xf32>, vector<1x4xf32> -> vector<2x4xf32>
    %c0_9 = arith.constant 0 : index
    %c0_10 = arith.constant 0 : index
    %c0_11 = arith.constant 0 : index
    %c0_12 = arith.constant 0 : index
    %80 = vector.load %arg4[%c0_9, %c0_10, %c0_11, %c0_12] : memref<1x1x2x4xf32, #tpu.memory_space<vmem>>, vector<1x1x2x4xf32>
    %81 = vector.shape_cast %80 : vector<1x1x2x4xf32> to vector<2x4xf32>
    %82 = vector.shape_cast %79 : vector<2x4xf32> to vector<1x1x2x4xf32>
    tpu.vector_store %arg4[%c0_9, %c0_10, %c0_11, %c0_12], %82 {strides = array<i32>} : memref<1x1x2x4xf32, #tpu.memory_space<vmem>>, vector<1x1x2x4xf32>,
    return
  }
  func.func @transform_0(%arg0: i32, %arg1: i32) -> (i32, i32, i32, i32) {
    %c0_i32 = arith.constant 0 : i32
    %c0_i32_0 = arith.constant 0 : i32
    %c0_i32_1 = arith.constant 0 : i32
    return %arg1, %c0_i32, %c0_i32_0, %arg0 : i32, i32, i32, i32
  }
  func.func @transform_1(%arg0: i32, %arg1: i32) -> (i32, i32, i32) {
    %c0_i32 = arith.constant 0 : i32
    %c0_i32_0 = arith.constant 0 : i32
    %c0_i32_1 = arith.constant 0 : i32
    return %c0_i32, %c0_i32_0, %arg0 : i32, i32, i32
  }
  func.func @transform_2(%arg0: i32, %arg1: i32) -> (i32, i32, i32, i32) {
    %c0_i32 = arith.constant 0 : i32
    %c0_i32_0 = arith.constant 0 : i32
    %c0_i32_1 = arith.constant 0 : i32
    return %arg0, %arg1, %c0_i32, %c0_i32_0 : i32, i32, i32, i32
  }
}

</mosaic_0001>

<bundles_post_ra>
// kernel: tpu_custom_call.1
= control target key start
LH: loop header
LB: loop body
LE: loop exit
PB: predicated region body
PF: predicated region fallthrough
CT: control target
= control target key end

     0   :  { %7 = vsyncpa [#allocation3], 0  ;;  %s3404_s0 = inlined_call_operand.vmem [shape: f32[2,16,16,4], index: 0, kind: input, shape index: {}]   ;;  %s3405_s1 = inlined_call_operand.vmem [shape: f32[3,3,4], index: 1, kind: input, shape index: {}]   ;;  %s3406_s2 = inlined_call_operand.hbm [shape: f32[1,2,2,4], index: 2, kind: output, shape index: {}]  }
   0x1   :  { %9 = vsyncpa [#allocation3 + $0x1], 0  ;;  %s1496_s9 = smov 0   ;;  %s1498_s10 = smov 0  }
   0x2   :  { %s1500_s11 = smov 0   ;;  %s1502_s12 = smov 0  }
   0x3   :  { %s1504_s13 = smov 0   ;;  %s1506_s14 = smov 0  }
   0x4 LB: > { %s1331_s15 = sadd.s32 4294967295, %s1478_s14   ;;  %s1332_s16 = sadd.s32 4294967294, %s1478_s14   ;;  %s1478_s14 = sphi %s1506_s14, %s15_s14   ;;  %s1474_s13 = sphi %s1504_s13, %s4013_s13   ;;  %s1470_s12 = sphi %s1502_s12, %s4012_s12   ;;  %s1466_s11 = sphi %s1500_s11, %s4011_s11   ;;  %s1462_s10 = sphi %s1498_s10, %s4010_s10   ;;  %s1458_s9 = sphi %s1496_s9, %s4009_s9  }
   0x5   : > { %s24_s17 = sadd.s32 1, %s1474_s13  ;;  %s90_s18 = sadd.s32 1, %s1466_s11 }
   0x6   : > { %p25_p0 = scmp.ge.s32.totalorder %s24_s17, 2  ;;  %p100_p1 = scmp.ne.s32.totalorder %s1466_s11, %s1462_s10 }
   0x7   : > { %p101_p2 = scmp.eq.s32.totalorder %s1331_s15, 1  ;;  %p106_p3 = scmp.ne.s32.totalorder %s1462_s10, %s1458_s9 }
   0x8   : > { %s4015_s17 = smov (%p25_p0, %s24_s17), 0  ;;  %p107_p5 = scmp.eq.s32.totalorder %s1332_s16, 1 }
   0x9   : > { %p1536_p4 = por %p101_p2, %p100_p1  ;;  %s86_s20 = ssub.s32 %s1474_s13, %s4015_s17 }
   0xa   : > { %p1336_p6 = scmp.ge.s32.totalorder %s1478_s14, 1  ;;  %p88_p7 = scmp.eq.s32.totalorder %s86_s20, 0 }
   0xb   : > { %p1543_p8 = por %p107_p5, %p106_p3  ;;  %p143_p9 = scmp.lt.s32.totalorder %s1478_s14, 3 }
   0xc   : > { %s1549_s22 = scalar_select %p88_p7, %s1466_s11, %s90_s18  }
   0xd   : > { %p144_p10 = pnand %p1336_p6, %p143_p9 }
   0xf   : > { %147 = sbr.rel (%p144_p10) target bundleno = 300 (0x12c), region = 28 }
  0x16   : > { %p172_p11 = scmp.lt.s32.totalorder %s1470_s12, 1  ;;  %v219_v0 = vlaneseq  ;;  %v216_v3 = vld [vmem:[%s3405_s1] sm:$0x7]  ;;  %v217_v4 = vld [vmem:[%s3405_s1 + $0x4] sm:$0x7]  ;;  %vm761_vm0 = vcmask 1040384  }
  0x17   : > { %v1567_v6 = vld [vmem:[%s3405_s1 + $0x8] sm:$0x7]  ;;  %vm890_vm1 = vcmask 1046528   ;;  %vm1051_vm2 = vcmask 31744   ;;  %s169_s6 = sand.u32 1, %s1462_s10   ;;  %s1341_s8 = sshll.u32 %s1470_s12, 5 }
  0x18   : > { %s173_s23 = scalar_select %p172_p11, %s1470_s12, 1  ;;  %v220_v1 = vshrl.u32 %v219_v0, 7  ;;  %3550 = vst [vmem:[#allocation5_spill] sm:$0xff] %v1567_v6  ;;  %vm1223_vm3 = vcmask 25600  }
  0x19   : > { %s1337_s7 = sshll.u32 %s169_s6, 1  ;;  %s1480_s12 = smov [#allocation2]  }
  0x1a   : > { %s1344_s24 = sshll.u32 %s173_s23, 8  ;;  %v221_v2 = vsub.s32 0, %v220_v1  ;;  %v391_v5 = vsub.s32 1, %v220_v1  ;;  %v1569_v7 = vsub.s32 2, %v220_v1  ;;  %s171_s15 = scalar_lea.vmem [#allocation2], %s1337_s7 }
  0x1b   : > { %s1562_s3 = scalar_lea.vmem %s3404_s0, %s1344_s24  ;;  %s1241_s16 = sshll.u32 %s171_s15, 4  ;;  %s3358_s16 = int_to_ptr.vmem [resolvable:$true] %s1241_s16 }
  0x1c   : > { %3551 = vst [vmem:[#allocation6_spill] sm:$0xff] %v1569_v7  ;;  %v1571_v8 = vrot.slane %v216_v3, %v221_v2  ;;  %v1573_v9 = vrot.slane %v217_v4, %v221_v2  ;;  %v1576_v10 = vld [vmem:[%s1562_s3] sm:$0xff]  ;;  %v1579_v11 = vrot.slane %v1567_v6, %v221_v2  ;;  %v1581_v12 = vrot.slane %v216_v3, %v391_v5  ;;  %v1584_v13 = vld [vmem:[%s1562_s3 + $0x8] sm:$0xff]  ;;  %v1587_v14 = vld [vmem:[%s1562_s3 + $0x10] sm:$0xff]  ;;  %s3356_s23 = scalar_lea.hbm %s3406_s2, %s1341_s8  ;;  %s1226_s24 = scalar_lea.sflag [#allocation3], %s169_s6 }
  0x1d   : > { %3552 = vst [vmem:[#allocation7_spill] sm:$0xff] %v1576_v10  ;;  %3555 = vst [vmem:[#allocation10_spill] sm:$0xff] %v1584_v13  ;;  %v1589_v15 = vrot.slane %v217_v4, %v391_v5  ;;  %v1592_v16 = vrot.slane %v1567_v6, %v391_v5  ;;  %v1595_v17 = vrot.slane %v216_v3, %v1569_v7  ;;  %v1601_v19 = vld [vmem:[%s1562_s3 + $0x18] sm:$0xff]  ;;  %v1604_v20 = vld [vmem:[%s1562_s3 + $0x20] sm:$0xff]  ;;  %s1400_s25 = scalar_lea.vmem %s3358_s16, 32  ;;  %s1404_s26 = sshll.u32 %s1480_s12, 4  ;;  %s1405_s26 = int_to_ptr.vmem [resolvable:$false] %s1404_s26 }
  0x1e   : > { %3553 = vst [vmem:[#allocation8_spill] sm:$0xff] %v1579_v11  ;;  %3554 = vst [vmem:[#allocation9_spill] sm:$0xff] %v1581_v12  ;;  %v1598_v18 = vrot.slane %v217_v4, %v1569_v7  ;;  %v1607_v21 = vld [vmem:[%s1562_s3 + $0x28] sm:$0xff]  ;;  %v1610_v22 = vmul.f32 0.0, %v1571_v8  ;;  %v1614_v23 = vmul.f32 %v1571_v8, %v1576_v10  ;;  %v1618_v24 = vmul.f32 %v1571_v8, %v1584_v13  ;;  %v1625_v26 = vld [vmem:[%s1562_s3 + $0x30] sm:$0xff]  ;;  %p1401_p12 = scmp.ne.s32.totalorder %s3358_s16, %s1400_s25  ;;  %s1406_s27 = scalar_lea.vmem %s1405_s26, 64 }
  0x1f   : > { %3556 = vst [vmem:[#allocation11_spill] sm:$0xff] %v1587_v14  ;;  %3557 = vst [vmem:[#allocation12_spill] sm:$0xff] %v1589_v15  ;;  %v1622_v25 = vmul.f32 %v1571_v8, %v1587_v14  ;;  %v1628_v27 = vld [vmem:[%s1562_s3 + $0x38] sm:$0xff]  ;;  %v1631_v28 = vld [vmem:[%s1562_s3 + $0x40] sm:$0xff]  ;;  %v1635_v29 = vmul.f32 %v1571_v8, %v1601_v19  ;;  %v1639_v30 = vmul.f32 %v1571_v8, %v1604_v20  ;;  %p1407_p1 = scmp.lt.s32.totalorder %s3358_s16, %s1405_s26  ;;  %p1408_p2 = scmp.lt.s32.totalorder %s1406_s27, %s1400_s25 }
  0x20   : > { %3558 = vst [vmem:[#allocation13_spill] sm:$0xff] %v1592_v16  ;;  %3559 = vst [vmem:[#allocation14_spill] sm:$0xff] %v1595_v17  ;;  %v1643_v31 = vmul.f32 %v1571_v8, %v1607_v21  ;;  %v1647_v32 = vmul.f32 %v1573_v9, %v1576_v10  ;;  %v1650_v33 = vld [vmem:[%s1562_s3 + $0x48] sm:$0xff]  ;;  %v1653_v34 = vld [vmem:[%s1562_s3 + $0x50] sm:$0xff]  ;;  %v1660_v36 = vmul.f32 %v1571_v8, %v1625_v26  ;;  %p1402_p13 = pnand %p1401_p12, %p1536_p4 }
  0x21   : > { %3560 = vst [vmem:[#allocation15_spill] sm:$0xff] %v1598_v18  ;;  %3561 = vst [vmem:[#allocation16_spill] sm:$0xff] %v1601_v19  ;;  %v1656_v35 = vld [vmem:[%s1562_s3 + $0x58] sm:$0xff]  ;;  %v1664_v37 = vmul.f32 %v1571_v8, %v1628_v27  ;;  %v1668_v38 = vmul.f32 %v1571_v8, %v1631_v28  ;;  %v1672_v39 = vmul.f32 %v1573_v9, %v1584_v13  ;;  %v1675_v40 = vld [vmem:[%s1562_s3 + $0x60] sm:$0xff]  ;;  %p1409_p3 = por %p1408_p2, %p1407_p1 }
  0x22   : > { %3562 = vst [vmem:[#allocation17_spill] sm:$0xff] %v1604_v20  ;;  %3563 = vst [vmem:[#allocation18_spill] sm:$0xff] %v1607_v21  ;;  %v1678_v41 = vld [vmem:[%s1562_s3 + $0x68] sm:$0xff]  ;;  %v1681_v42 = vld [vmem:[%s1562_s3 + $0x70] sm:$0xff]  ;;  %v1685_v43 = vmul.f32 %v1571_v8, %v1650_v33  ;;  %v1689_v44 = vmul.f32 %v1571_v8, %v1653_v34  ;;  %v1693_v45 = vmul.f32 %v1571_v8, %v1656_v35  ;;  %p1403_p0 = pneg %p1402_p13 }
  0x23   : > { %3564 = vst [vmem:[#allocation19_spill] sm:$0xff] %v1625_v26  ;;  %3565 = vst [vmem:[#allocation20_spill] sm:$0xff] %v1628_v27  ;;  %v1697_v46 = vmul.f32 %v1573_v9, %v1587_v14  ;;  %v1700_v47 = vld [vmem:[%s1562_s3 + $0x78] sm:$0xff]  ;;  %v1703_v48 = vld [vmem:[%s1562_s3 + $0x80] sm:$0xff]  ;;  %v1710_v50 = vmul.f32 %v1571_v8, %v1675_v40  ;;  %v1714_v51 = vmul.f32 %v1571_v8, %v1678_v41 }
  0x24   : > { %3566 = vst [vmem:[#allocation21_spill] sm:$0xff] %v1631_v28  ;;  %3567 = vst [vmem:[#allocation22_spill] sm:$0xff] %v1650_v33  ;;  %v1706_v49 = vld [vmem:[%s1562_s3 + $0x88] sm:$0xff]  ;;  %v1718_v52 = vmul.f32 %v1571_v8, %v1681_v42  ;;  %v261_v53 = vmul.f32 %v1573_v9, %v1601_v19  ;;  %v1723_v54 = vld [vmem:[%s1562_s3 + $0x90] sm:$0xff]  ;;  %v1733_v57 = vmul.f32 %v1571_v8, %v1700_v47  ;;  %p1410_p5 = pnand %p1409_p3, %p1403_p0 }
  0x25   : > { %3568 = vst [vmem:[#allocation23_spill] sm:$0xff] %v1653_v34  ;;  %3569 = vst [vmem:[#allocation24_spill] sm:$0xff] %v1656_v35  ;;  %v1726_v55 = vld [vmem:[%s1562_s3 + $0x98] sm:$0xff]  ;;  %v1729_v56 = vld [vmem:[%s1562_s3 + $0xa0] sm:$0xff]  ;;  %v1737_v58 = vmul.f32 %v1571_v8, %v1703_v48  ;;  %v1741_v59 = vmul.f32 %v1571_v8, %v1706_v49  ;;  %v262_v60 = vmul.f32 %v1573_v9, %v1604_v20 }
  0x26   : > { %3570 = vst [vmem:[#allocation25_spill] sm:$0xff] %v1675_v40  ;;  %3571 = vst [vmem:[#allocation26_spill] sm:$0xff] %v1678_v41  ;;  %v1746_v61 = vld [vmem:[%s1562_s3 + $0xa8] sm:$0xff]  ;;  %v1749_v62 = vld [vmem:[%s1562_s3 + $0xb0] sm:$0xff]  ;;  %v1756_v0 = vmul.f32 %v1571_v8, %v1723_v54  ;;  %v1760_v1 = vmul.f32 %v1571_v8, %v1726_v55  ;;  %v1764_v2 = vmul.f32 %v1571_v8, %v1729_v56 }
  0x27   : > { %3572 = vst [vmem:[#allocation27_spill] sm:$0xff] %v1681_v42  ;;  %3573 = vst [vmem:[#allocation28_spill] sm:$0xff] %v1700_v47  ;;  %v1752_v63 = vld [vmem:[%s1562_s3 + $0xb8] sm:$0xff]  ;;  %v263_v3 = vmul.f32 %v1573_v9, %v1607_v21  ;;  %v1769_v4 = vld [vmem:[%s1562_s3 + $0xc0] sm:$0xff]  ;;  %v1779_v7 = vmul.f32 %v1571_v8, %v1746_v61  ;;  %v1783_v18 = vmul.f32 %v1571_v8, %v1749_v62 }
  0x28   : > { %3574 = vst [vmem:[#allocation29_spill] sm:$0xff] %v1703_v48  ;;  %3575 = vst [vmem:[#allocation30_spill] sm:$0xff] %v1706_v49  ;;  %v1772_v5 = vld [vmem:[%s1562_s3 + $0xc8] sm:$0xff]  ;;  %v1775_v6 = vld [vmem:[%s1562_s3 + $0xd0] sm:$0xff]  ;;  %v1787_v17 = vmul.f32 %v1571_v8, %v1752_v63  ;;  %v264_v16 = vmul.f32 %v1573_v9, %v1625_v26  ;;  %v248_v12 = vmul.f32 %v1571_v8, %v1769_v4 }
  0x29   : > { %3576 = vst [vmem:[#allocation31_spill] sm:$0xff] %v1723_v54  ;;  %3577 = vst [vmem:[#allocation32_spill] sm:$0xff] %v1726_v55  ;;  %v1792_v15 = vld [vmem:[%s1562_s3 + $0xd8] sm:$0xff]  ;;  %v1795_v13 = vld [vmem:[%s1562_s3 + $0xe0] sm:$0xff]  ;;  %v249_v21 = vmul.f32 %v1571_v8, %v1772_v5  ;;  %v250_v20 = vmul.f32 %v1571_v8, %v1775_v6  ;;  %v265_v19 = vmul.f32 %v1573_v9, %v1628_v27 }
  0x2a   : > { %3578 = vst [vmem:[#allocation33_spill] sm:$0xff] %v1729_v56  ;;  %3579 = vst [vmem:[#allocation34_spill] sm:$0xff] %v1741_v59  ;;  %v1798_v10 = vld [vmem:[%s1562_s3 + $0xe8] sm:$0xff]  ;;  %v251_v26 = vmul.f32 %v1571_v8, %v1792_v15  ;;  %v252_v11 = vmul.f32 %v1571_v8, %v1795_v13  ;;  %v269_v27 = vmul.f32 %v1573_v9, %v1656_v35 }
  0x2b   : > { %3580 = vst [vmem:[#allocation35_spill] sm:$0xff] %v1746_v61  ;;  %3581 = vst [vmem:[#allocation36_spill] sm:$0xff] %v1749_v62  ;;  %v253_v14 = vmul.f32 %v1571_v8, %v1798_v10  ;;  %v271_v8 = vmul.f32 %v1573_v9, %v1678_v41  ;;  %v276_v35 = vmul.f32 %v1573_v9, %v1723_v54  ;;  %v1852_v54 = vld [vmem:[%s1562_s3 + $0xf8] sm:$0xff] }
  0x2c   : > { %3582 = vst [vmem:[#allocation37_spill] sm:$0xff] %v1752_v63  ;;  %3583 = vst [vmem:[#allocation38_spill] sm:$0xff] %v1756_v0  ;;  %v278_v41 = vmul.f32 %v1573_v9, %v1729_v56  ;;  %v1849_v0 = vld [vmem:[%s1562_s3 + $0xf0] sm:$0xff]  ;;  %v284_v56 = vmul.f32 %v1573_v9, %v1775_v6  ;;  %v289_v59 = vmul.f32 %v1573_v9, %v1852_v54 }
  0x2d   : > { %3584 = vst [vmem:[#allocation39_spill] sm:$0xff] %v1760_v1  ;;  %3585 = vst [vmem:[#allocation40_spill] sm:$0xff] %v1764_v2  ;;  %v270_v2 = vmul.f32 %v1573_v9, %v1675_v40  ;;  %v274_v1 = vmul.f32 %v1573_v9, %v1703_v48  ;;  %v277_v40 = vmul.f32 %v1573_v9, %v1726_v55 }
  0x2e   : > { %3586 = vst [vmem:[#allocation41_spill] sm:$0xff] %v1769_v4  ;;  %3587 = vst [vmem:[#allocation42_spill] sm:$0xff] %v1772_v5  ;;  %v281_v48 = vmul.f32 %v1573_v9, %v1752_v63  ;;  %v283_v55 = vmul.f32 %v1573_v9, %v1772_v5  ;;  %v287_v63 = vmul.f32 %v1573_v9, %v1798_v10 }
  0x2f   : > { %3588 = vst [vmem:[#allocation43_spill] sm:$0xff] %v1775_v6  ;;  %3589 = vst [vmem:[#allocation44_spill] sm:$0xff] %v1779_v7  ;;  %v268_v7 = vmul.f32 %v1573_v9, %v1653_v34  ;;  %v275_v34 = vmul.f32 %v1573_v9, %v1706_v49  ;;  %v282_v49 = vmul.f32 %v1573_v9, %v1769_v4 }
  0x30   : > { %3590 = vst [vmem:[#allocation45_spill] sm:$0xff] %v1783_v18  ;;  %3591 = vst [vmem:[#allocation46_spill] sm:$0xff] %v1787_v17  ;;  %v266_v17 = vmul.f32 %v1573_v9, %v1631_v28  ;;  %v267_v18 = vmul.f32 %v1573_v9, %v1650_v33  ;;  %v272_v28 = vmul.f32 %v1573_v9, %v1681_v42 }
  0x31   : > { %3592 = vst [vmem:[#allocation47_spill] sm:$0xff] %v1792_v15  ;;  %3593 = vst [vmem:[#allocation48_spill] sm:$0xff] %v1795_v13  ;;  %v273_v33 = vmul.f32 %v1573_v9, %v1700_v47  ;;  %v279_v42 = vmul.f32 %v1573_v9, %v1746_v61  ;;  %v280_v47 = vmul.f32 %v1573_v9, %v1749_v62 }
  0x32   : > { %3594 = vst [vmem:[#allocation49_spill] sm:$0xff] %v1798_v10  ;;  %3595 = vst [vmem:[#allocation50_spill] sm:$0xff] %v1849_v0  ;;  %v285_v61 = vmul.f32 %v1573_v9, %v1792_v15  ;;  %v286_v62 = vmul.f32 %v1573_v9, %v1795_v13  ;;  %v288_v4 = vmul.f32 %v1573_v9, %v1849_v0 }
  0x33   : > { %v1870_v5 = vadd.f32 %v1647_v32, %v1610_v22  ;;  %v1874_v6 = vadd.f32 %v1672_v39, %v1610_v22  ;;  %v1878_v13 = vadd.f32 %v1697_v46, %v1614_v23  ;;  %v1881_v10 = vadd.f32 %v261_v53, %v1618_v24 }
  0x34   : > { %v1884_v0 = vadd.f32 %v262_v60, %v1622_v25  ;;  %v1887_v9 = vadd.f32 %v263_v3, %v1635_v29  ;;  %v1890_v32 = vadd.f32 %v264_v16, %v1639_v30  ;;  %v1896_v22 = vadd.f32 %v266_v17, %v1660_v36  ;;  %v3597_v30 = vld [vmem:[#allocation34_spill] sm:$0xff]  ;;  %v3622_v3 = vld [vmem:[#allocation25_spill] sm:$0xff] }
  0x35   : > { %3596 = vst [vmem:[#allocation51_spill] sm:$0xff] %v1870_v5  ;;  %v1893_v5 = vadd.f32 %v265_v19, %v1643_v31  ;;  %v1899_v23 = vadd.f32 %v267_v18, %v1664_v37  ;;  %v1902_v24 = vadd.f32 %v268_v7, %v1668_v38  ;;  %v1905_v25 = vadd.f32 %v269_v27, %v1685_v43  ;;  %v3598_v36 = vld [vmem:[#allocation38_spill] sm:$0xff] }
  0x36   : > { %v1908_v29 = vadd.f32 %v270_v2, %v1689_v44  ;;  %v1911_v16 = vadd.f32 %v271_v8, %v1693_v45  ;;  %v1914_v19 = vadd.f32 %v272_v28, %v1710_v50  ;;  %v1917_v17 = vadd.f32 %v273_v33, %v1714_v51  ;;  %v3599_v28 = vld [vmem:[#allocation39_spill] sm:$0xff]  ;;  %v3600_v33 = vld [vmem:[#allocation40_spill] sm:$0xff]  ;;  %v3619_v60 = vld [vmem:[#allocation22_spill] sm:$0xff] }
  0x37   : > { %v1920_v18 = vadd.f32 %v274_v1, %v1718_v52  ;;  %v1923_v7 = vadd.f32 %v275_v34, %v1733_v57  ;;  %v1926_v27 = vadd.f32 %v276_v35, %v1737_v58  ;;  %v1929_v31 = vadd.f32 %v277_v40, %v3597_v30  ;;  %v3601_v43 = vld [vmem:[#allocation44_spill] sm:$0xff]  ;;  %v3602_v34 = vld [vmem:[#allocation45_spill] sm:$0xff]  ;;  %v3603_v35 = vld [vmem:[#allocation46_spill] sm:$0xff] }
  0x38   : > { %v1932_v37 = vadd.f32 %v278_v41, %v3598_v36  ;;  %v1935_v38 = vadd.f32 %v279_v42, %v3599_v28  ;;  %v1938_v39 = vadd.f32 %v280_v47, %v3600_v33  ;;  %v1941_v44 = vadd.f32 %v281_v48, %v3601_v43  ;;  %v3611_v48 = vld [vmem:[#allocation11_spill] sm:$0xff]  ;;  %v3612_v52 = vld [vmem:[#allocation8_spill] sm:$0xff]  ;;  %v3623_v8 = vld [vmem:[#allocation26_spill] sm:$0xff] }
  0x39   : > { %v1944_v45 = vadd.f32 %v282_v49, %v3602_v34  ;;  %v1947_v46 = vadd.f32 %v283_v55, %v3603_v35  ;;  %v1949_v40 = vadd.f32 %v284_v56, %v248_v12  ;;  %v1951_v50 = vadd.f32 %v285_v61, %v249_v21  ;;  %v3613_v49 = vld [vmem:[#allocation16_spill] sm:$0xff]  ;;  %v3614_v55 = vld [vmem:[#allocation17_spill] sm:$0xff]  ;;  %v3615_v56 = vld [vmem:[#allocation18_spill] sm:$0xff] }
  0x3a   : > { %v1953_v41 = vadd.f32 %v286_v62, %v250_v20  ;;  %v1955_v42 = vadd.f32 %v287_v63, %v251_v26  ;;  %v1957_v51 = vadd.f32 %v288_v4, %v252_v11  ;;  %v1959_v47 = vadd.f32 %v289_v59, %v253_v14  ;;  %v3616_v20 = vld [vmem:[#allocation19_spill] sm:$0xff]  ;;  %v3617_v58 = vld [vmem:[#allocation20_spill] sm:$0xff]  ;;  %v3618_v14 = vld [vmem:[#allocation21_spill] sm:$0xff] }
  0x3b   : > { %3604 = vst [vmem:[#allocation34_spill] sm:$0xff] %v1947_v46  ;;  %3605 = vst [vmem:[#allocation38_spill] sm:$0xff] %v1949_v40  ;;  %v326_v53 = vmul.f32 %v3612_v52, %v3611_v48  ;;  %v327_v57 = vmul.f32 %v3612_v52, %v3613_v49  ;;  %v328_v12 = vmul.f32 %v3612_v52, %v3614_v55  ;;  %v3620_v62 = vld [vmem:[#allocation23_spill] sm:$0xff]  ;;  %v3621_v1 = vld [vmem:[#allocation24_spill] sm:$0xff] }
  0x3c   : > { %3606 = vst [vmem:[#allocation39_spill] sm:$0xff] %v1951_v50  ;;  %3607 = vst [vmem:[#allocation40_spill] sm:$0xff] %v1953_v41  ;;  %v329_v21 = vmul.f32 %v3612_v52, %v3615_v56  ;;  %v330_v26 = vmul.f32 %v3612_v52, %v3616_v20  ;;  %v331_v11 = vmul.f32 %v3612_v52, %v3617_v58  ;;  %v3624_v36 = vld [vmem:[#allocation27_spill] sm:$0xff]  ;;  %v3625_v33 = vld [vmem:[#allocation28_spill] sm:$0xff] }
  0x3d   : > { %3608 = vst [vmem:[#allocation44_spill] sm:$0xff] %v1955_v42  ;;  %3609 = vst [vmem:[#allocation45_spill] sm:$0xff] %v1957_v51  ;;  %v332_v59 = vmul.f32 %v3612_v52, %v3618_v14  ;;  %v333_v61 = vmul.f32 %v3612_v52, %v3619_v60  ;;  %v334_v63 = vmul.f32 %v3612_v52, %v3620_v62  ;;  %v3626_v34 = vld [vmem:[#allocation29_spill] sm:$0xff]  ;;  %v3627_v60 = vld [vmem:[#allocation30_spill] sm:$0xff] }
  0x3e   : > { %3610 = vst [vmem:[#allocation46_spill] sm:$0xff] %v1959_v47  ;;  %v335_v2 = vmul.f32 %v3612_v52, %v3621_v1  ;;  %v336_v4 = vmul.f32 %v3612_v52, %v3622_v3  ;;  %v337_v30 = vmul.f32 %v3612_v52, %v3623_v8  ;;  %v338_v28 = vmul.f32 %v3612_v52, %v3624_v36  ;;  %v3628_v14 = vld [vmem:[#allocation31_spill] sm:$0xff]  ;;  %v3629_v58 = vld [vmem:[#allocation32_spill] sm:$0xff]  ;;  %v3630_v20 = vld [vmem:[#allocation33_spill] sm:$0xff] }
  0x3f   : > { %v339_v43 = vmul.f32 %v3612_v52, %v3625_v33  ;;  %v340_v35 = vmul.f32 %v3612_v52, %v3626_v34  ;;  %v341_v62 = vmul.f32 %v3612_v52, %v3627_v60  ;;  %v342_v1 = vmul.f32 %v3612_v52, %v3628_v14  ;;  %v3631_v56 = vld [vmem:[#allocation35_spill] sm:$0xff]  ;;  %v3632_v55 = vld [vmem:[#allocation36_spill] sm:$0xff]  ;;  %v3633_v49 = vld [vmem:[#allocation37_spill] sm:$0xff] }
  0x40   : > { %v343_v3 = vmul.f32 %v3612_v52, %v3629_v58  ;;  %v344_v8 = vmul.f32 %v3612_v52, %v3630_v20  ;;  %v345_v36 = vmul.f32 %v3612_v52, %v3631_v56  ;;  %v346_v33 = vmul.f32 %v3612_v52, %v3632_v55  ;;  %v3634_v48 = vld [vmem:[#allocation41_spill] sm:$0xff]  ;;  %v3635_v47 = vld [vmem:[#allocation42_spill] sm:$0xff]  ;;  %v3636_v51 = vld [vmem:[#allocation43_spill] sm:$0xff] }
  0x41   : > { %v347_v34 = vmul.f32 %v3612_v52, %v3633_v49  ;;  %v348_v60 = vmul.f32 %v3612_v52, %v3634_v48  ;;  %v349_v14 = vmul.f32 %v3612_v52, %v3635_v47  ;;  %v350_v58 = vmul.f32 %v3612_v52, %v3636_v51  ;;  %v3637_v42 = vld [vmem:[#allocation48_spill] sm:$0xff]  ;;  %v3638_v41 = vld [vmem:[#allocation49_spill] sm:$0xff]  ;;  %v3639_v50 = vld [vmem:[#allocation50_spill] sm:$0xff] }
  0x42   : > { %v351_v20 = vmul.f32 %v3612_v52, %v1792_v15  ;;  %v352_v56 = vmul.f32 %v3612_v52, %v3637_v42  ;;  %v353_v55 = vmul.f32 %v3612_v52, %v3638_v41  ;;  %v354_v49 = vmul.f32 %v3612_v52, %v3639_v50  ;;  %v3640_v40 = vld [vmem:[#allocation51_spill] sm:$0xff] }
  0x43   : > { %v355_v48 = vmul.f32 %v3612_v52, %v1852_v54  ;;  %v356_v47 = vmul.f32 0.0, %v3612_v52  ;;  %v2023_v46 = vadd.f32 %v326_v53, %v3640_v40  ;;  %v2026_v51 = vadd.f32 %v327_v57, %v1874_v6 }
  0x44   : > { %v2029_v15 = vadd.f32 %v328_v12, %v1878_v13  ;;  %v2032_v42 = vadd.f32 %v329_v21, %v1881_v10  ;;  %v2035_v41 = vadd.f32 %v330_v26, %v1884_v0  ;;  %v2038_v50 = vadd.f32 %v331_v11, %v1887_v9 }
  0x45   : > { %3641 = vst [vmem:[#allocation8_spill] sm:$0xff] %v2023_v46  ;;  %3642 = vst [vmem:[#allocation51_spill] sm:$0xff] %v2026_v51  ;;  %v2041_v52 = vadd.f32 %v332_v59, %v1890_v32  ;;  %v2044_v40 = vadd.f32 %v333_v61, %v1893_v5  ;;  %v2047_v6 = vadd.f32 %v334_v63, %v1896_v22  ;;  %v3684_v61 = vld [vmem:[#allocation16_spill] sm:$0xff] }
  0x46   : > { %3643 = vst [vmem:[#allocation52_spill] sm:$0xff] %v2029_v15  ;;  %3644 = vst [vmem:[#allocation53_spill] sm:$0xff] %v2032_v42  ;;  %v2050_v13 = vadd.f32 %v335_v2, %v1899_v23  ;;  %v2053_v10 = vadd.f32 %v336_v4, %v1902_v24  ;;  %v2056_v0 = vadd.f32 %v337_v30, %v1905_v25  ;;  %v3716_v15 = vld [vmem:[#allocation49_spill] sm:$0xff]  ;;  %v3718_v46 = vld [vmem:[#allocation12_spill] sm:$0xff] }
  0x47   : > { %3645 = vst [vmem:[#allocation54_spill] sm:$0xff] %v2035_v41  ;;  %3646 = vst [vmem:[#allocation55_spill] sm:$0xff] %v2038_v50  ;;  %v2059_v9 = vadd.f32 %v338_v28, %v1908_v29  ;;  %v2062_v32 = vadd.f32 %v339_v43, %v1911_v16  ;;  %v2065_v5 = vadd.f32 %v340_v35, %v1914_v19  ;;  %v3714_v50 = vld [vmem:[#allocation48_spill] sm:$0xff] }
  0x48   : > { %3647 = vst [vmem:[#allocation56_spill] sm:$0xff] %v2041_v52  ;;  %3648 = vst [vmem:[#allocation57_spill] sm:$0xff] %v2044_v40  ;;  %v2068_v22 = vadd.f32 %v341_v62, %v1917_v17  ;;  %v2071_v23 = vadd.f32 %v342_v1, %v1920_v18  ;;  %v2074_v24 = vadd.f32 %v343_v3, %v1923_v7  ;;  %v3686_v1 = vld [vmem:[#allocation18_spill] sm:$0xff]  ;;  %v3687_v3 = vld [vmem:[#allocation19_spill] sm:$0xff] }
  0x49   : > { %3649 = vst [vmem:[#allocation58_spill] sm:$0xff] %v2047_v6  ;;  %3650 = vst [vmem:[#allocation59_spill] sm:$0xff] %v2050_v13  ;;  %v2077_v25 = vadd.f32 %v344_v8, %v1926_v27  ;;  %v2080_v29 = vadd.f32 %v345_v36, %v1929_v31  ;;  %v2083_v16 = vadd.f32 %v346_v33, %v1932_v37  ;;  %v3666_v27 = vld [vmem:[#allocation34_spill] sm:$0xff]  ;;  %v3670_v37 = vld [vmem:[#allocation39_spill] sm:$0xff] }
  0x4a   : > { %3651 = vst [vmem:[#allocation60_spill] sm:$0xff] %v2053_v10  ;;  %3652 = vst [vmem:[#allocation61_spill] sm:$0xff] %v2056_v0  ;;  %v2086_v19 = vadd.f32 %v347_v34, %v1935_v38  ;;  %v2089_v17 = vadd.f32 %v348_v60, %v1938_v39  ;;  %v2092_v18 = vadd.f32 %v349_v14, %v1941_v44  ;;  %v3668_v31 = vld [vmem:[#allocation38_spill] sm:$0xff]  ;;  %v3672_v38 = vld [vmem:[#allocation40_spill] sm:$0xff] }
  0x4b   : > { %3653 = vst [vmem:[#allocation62_spill] sm:$0xff] %v2059_v9  ;;  %3654 = vst [vmem:[#allocation63_spill] sm:$0xff] %v2062_v32  ;;  %v2095_v7 = vadd.f32 %v350_v58, %v1944_v45  ;;  %v2098_v53 = vadd.f32 %v351_v20, %v3666_v27  ;;  %v2101_v57 = vadd.f32 %v352_v56, %v3668_v31  ;;  %v3674_v39 = vld [vmem:[#allocation44_spill] sm:$0xff]  ;;  %v3676_v44 = vld [vmem:[#allocation45_spill] sm:$0xff] }
  0x4c   : > { %3655 = vst [vmem:[#allocation64_spill] sm:$0xff] %v2065_v5  ;;  %3656 = vst [vmem:[#allocation65_spill] sm:$0xff] %v2068_v22  ;;  %v2104_v12 = vadd.f32 %v353_v55, %v3670_v37  ;;  %v2107_v21 = vadd.f32 %v354_v49, %v3672_v38  ;;  %v2110_v26 = vadd.f32 %v355_v48, %v3674_v39  ;;  %v3678_v45 = vld [vmem:[#allocation46_spill] sm:$0xff]  ;;  %v3680_v20 = vld [vmem:[#allocation9_spill] sm:$0xff] }
  0x4d   : > { %3657 = vst [vmem:[#allocation66_spill] sm:$0xff] %v2071_v23  ;;  %3658 = vst [vmem:[#allocation67_spill] sm:$0xff] %v2074_v24  ;;  %v2113_v11 = vadd.f32 %v356_v47, %v3676_v44  ;;  %v2116_v58 = vadd.f32 %v356_v47, %v3678_v45  ;;  %v2119_v14 = vmul.f32 0.0, %v3680_v20  ;;  %v3681_v56 = vld [vmem:[#allocation7_spill] sm:$0xff]  ;;  %v3682_v55 = vld [vmem:[#allocation10_spill] sm:$0xff]  ;;  %v2135_v62 = vmul.f32 %v3680_v20, %v3684_v61 }
  0x4e   : > { %3659 = vst [vmem:[#allocation68_spill] sm:$0xff] %v2077_v25  ;;  %3660 = vst [vmem:[#allocation69_spill] sm:$0xff] %v2080_v29  ;;  %v2123_v59 = vmul.f32 %v3680_v20, %v3681_v56  ;;  %v2127_v49 = vmul.f32 %v3680_v20, %v3682_v55  ;;  %v3683_v60 = vld [vmem:[#allocation11_spill] sm:$0xff]  ;;  %v3685_v47 = vld [vmem:[#allocation17_spill] sm:$0xff]  ;;  %v2143_v2 = vmul.f32 %v3680_v20, %v3686_v1 }
  0x4f   : > { %3661 = vst [vmem:[#allocation70_spill] sm:$0xff] %v2083_v16  ;;  %3662 = vst [vmem:[#allocation71_spill] sm:$0xff] %v2086_v19  ;;  %v2131_v48 = vmul.f32 %v3680_v20, %v3683_v60  ;;  %v2139_v63 = vmul.f32 %v3680_v20, %v3685_v47  ;;  %v2147_v4 = vmul.f32 %v3680_v20, %v3687_v3  ;;  %v3688_v8 = vld [vmem:[#allocation20_spill] sm:$0xff]  ;;  %v3689_v36 = vld [vmem:[#allocation21_spill] sm:$0xff] }
  0x50   : > { %3663 = vst [vmem:[#allocation72_spill] sm:$0xff] %v2089_v17  ;;  %3664 = vst [vmem:[#allocation73_spill] sm:$0xff] %v2092_v18  ;;  %v2151_v30 = vmul.f32 %v3680_v20, %v3688_v8  ;;  %v2155_v28 = vmul.f32 %v3680_v20, %v3689_v36  ;;  %v3690_v33 = vld [vmem:[#allocation22_spill] sm:$0xff]  ;;  %v3691_v34 = vld [vmem:[#allocation23_spill] sm:$0xff]  ;;  %v2235_v42 = vmul.f32 %v3680_v20, %v3714_v50 }
  0x51   : > { %3665 = vst [vmem:[#allocation74_spill] sm:$0xff] %v2095_v7  ;;  %3667 = vst [vmem:[#allocation34_spill] sm:$0xff] %v2098_v53  ;;  %v2159_v43 = vmul.f32 %v3680_v20, %v3690_v33  ;;  %v2163_v35 = vmul.f32 %v3680_v20, %v3691_v34  ;;  %v3692_v27 = vld [vmem:[#allocation24_spill] sm:$0xff]  ;;  %v3693_v37 = vld [vmem:[#allocation25_spill] sm:$0xff]  ;;  %v2239_v51 = vmul.f32 %v3680_v20, %v3716_v15 }
  0x52   : > { %3669 = vst [vmem:[#allocation38_spill] sm:$0xff] %v2101_v57  ;;  %3671 = vst [vmem:[#allocation39_spill] sm:$0xff] %v2104_v12  ;;  %v2167_v31 = vmul.f32 %v3680_v20, %v3692_v27  ;;  %v2171_v38 = vmul.f32 %v3680_v20, %v3693_v37  ;;  %v3694_v39 = vld [vmem:[#allocation26_spill] sm:$0xff]  ;;  %v3695_v45 = vld [vmem:[#allocation27_spill] sm:$0xff] }
  0x53   : > { %3673 = vst [vmem:[#allocation40_spill] sm:$0xff] %v2107_v21  ;;  %3675 = vst [vmem:[#allocation44_spill] sm:$0xff] %v2110_v26  ;;  %v2175_v44 = vmul.f32 %v3680_v20, %v3694_v39  ;;  %v3697_v57 = vld [vmem:[#allocation29_spill] sm:$0xff]  ;;  %v3698_v7 = vld [vmem:[#allocation30_spill] sm:$0xff] }
  0x54   : > { %3677 = vst [vmem:[#allocation45_spill] sm:$0xff] %v2113_v11  ;;  %3679 = vst [vmem:[#allocation46_spill] sm:$0xff] %v2116_v58  ;;  %v2179_v58 = vmul.f32 %v3680_v20, %v3695_v45  ;;  %v3696_v11 = vld [vmem:[#allocation28_spill] sm:$0xff]  ;;  %v2187_v26 = vmul.f32 %v3680_v20, %v3697_v57  ;;  %v2191_v12 = vmul.f32 %v3680_v20, %v3698_v7  ;;  %v3699_v17 = vld [vmem:[#allocation31_spill] sm:$0xff] }
  0x55   : > { %v2183_v21 = vmul.f32 %v3680_v20, %v3696_v11  ;;  %v2195_v16 = vmul.f32 %v3680_v20, %v3699_v17  ;;  %v3700_v25 = vld [vmem:[#allocation32_spill] sm:$0xff]  ;;  %v3701_v23 = vld [vmem:[#allocation33_spill] sm:$0xff]  ;;  %v3702_v19 = vld [vmem:[#allocation35_spill] sm:$0xff]  ;;  %3715 = vst [vmem:[#allocation79_spill] sm:$0xff] %v2235_v42  ;;  %v433_v42 = vmul.f32 %v3718_v46, %v3686_v1  ;;  %v440_v1 = vmul.f32 %v3718_v46, %v3693_v37 }
  0x56   : > { %v2199_v53 = vmul.f32 %v3680_v20, %v3700_v25  ;;  %v2203_v18 = vmul.f32 %v3680_v20, %v3701_v23  ;;  %v2207_v29 = vmul.f32 %v3680_v20, %v3702_v19  ;;  %v3703_v5 = vld [vmem:[#allocation36_spill] sm:$0xff]  ;;  %v3704_v22 = vld [vmem:[#allocation37_spill] sm:$0xff]  ;;  %v3708_v0 = vld [vmem:[#allocation42_spill] sm:$0xff]  ;;  %3717 = vst [vmem:[#allocation80_spill] sm:$0xff] %v2239_v51  ;;  %v447_v37 = vmul.f32 %v3718_v46, %v3700_v25 }
  0x57   : > { %v2211_v24 = vmul.f32 %v3680_v20, %v3703_v5  ;;  %v2215_v9 = vmul.f32 %v3680_v20, %v3704_v22  ;;  %v3706_v10 = vld [vmem:[#allocation41_spill] sm:$0xff]  ;;  %v2223_v6 = vmul.f32 %v3680_v20, %v3708_v0  ;;  %v3710_v52 = vld [vmem:[#allocation43_spill] sm:$0xff]  ;;  %v3719_v51 = vld [vmem:[#allocation50_spill] sm:$0xff] }
  0x58   : > { %v2219_v32 = vmul.f32 %v3680_v20, %v3706_v10  ;;  %v2227_v41 = vmul.f32 %v3680_v20, %v3710_v52  ;;  %v3712_v13 = vld [vmem:[#allocation47_spill] sm:$0xff]  ;;  %v454_v25 = vmul.f32 %v3718_v46, %v3710_v52 }
  0x59   : > { %3705 = vst [vmem:[#allocation9_spill] sm:$0xff] %v2215_v9  ;;  %3709 = vst [vmem:[#allocation76_spill] sm:$0xff] %v2223_v6  ;;  %v2231_v40 = vmul.f32 %v3680_v20, %v3712_v13  ;;  %v429_v6 = vmul.f32 %v3718_v46, %v3682_v55  ;;  %v432_v9 = vmul.f32 %v3718_v46, %v3685_v47 }
  0x5a   : > { %3707 = vst [vmem:[#allocation75_spill] sm:$0xff] %v2219_v32  ;;  %3711 = vst [vmem:[#allocation77_spill] sm:$0xff] %v2227_v41  ;;  %v428_v32 = vmul.f32 %v3718_v46, %v3681_v56  ;;  %v430_v41 = vmul.f32 %v3718_v46, %v3683_v60  ;;  %v434_v20 = vmul.f32 %v3718_v46, %v3687_v3 }
  0x5b   : > { %3713 = vst [vmem:[#allocation78_spill] sm:$0xff] %v2231_v40  ;;  %v431_v40 = vmul.f32 %v3718_v46, %v3684_v61  ;;  %v435_v56 = vmul.f32 %v3718_v46, %v3688_v8  ;;  %v436_v55 = vmul.f32 %v3718_v46, %v3689_v36  ;;  %v437_v60 = vmul.f32 %v3718_v46, %v3690_v33 }
  0x5c   : > { %v438_v61 = vmul.f32 %v3718_v46, %v3691_v34  ;;  %v439_v47 = vmul.f32 %v3718_v46, %v3692_v27  ;;  %v441_v3 = vmul.f32 %v3718_v46, %v3694_v39  ;;  %v442_v8 = vmul.f32 %v3718_v46, %v3695_v45 }
  0x5d   : > { %v443_v36 = vmul.f32 %v3718_v46, %v3696_v11  ;;  %v444_v33 = vmul.f32 %v3718_v46, %v3697_v57  ;;  %v445_v34 = vmul.f32 %v3718_v46, %v3698_v7  ;;  %v446_v27 = vmul.f32 %v3718_v46, %v3699_v17 }
  0x5e   : > { %v448_v39 = vmul.f32 %v3718_v46, %v3701_v23  ;;  %v449_v45 = vmul.f32 %v3718_v46, %v3702_v19  ;;  %v450_v11 = vmul.f32 %v3718_v46, %v3703_v5  ;;  %v451_v57 = vmul.f32 %v3718_v46, %v3704_v22 }
  0x5f   : > { %v452_v7 = vmul.f32 %v3718_v46, %v3706_v10  ;;  %v453_v17 = vmul.f32 %v3718_v46, %v3708_v0  ;;  %v455_v23 = vmul.f32 %v3718_v46, %v3712_v13  ;;  %v456_v19 = vmul.f32 %v3718_v46, %v3714_v50 }
  0x60   : > { %v457_v5 = vmul.f32 %v3718_v46, %v3716_v15  ;;  %v458_v22 = vmul.f32 %v3718_v46, %v3719_v51  ;;  %v459_v10 = vmul.f32 %v3718_v46, %v1852_v54  ;;  %v2306_v0 = vadd.f32 %v428_v32, %v2119_v14 }
  0x61   : > { %v2309_v52 = vadd.f32 %v429_v6, %v2119_v14  ;;  %v2312_v13 = vadd.f32 %v430_v41, %v2123_v59  ;;  %v2315_v50 = vadd.f32 %v431_v40, %v2127_v49  ;;  %v2318_v15 = vadd.f32 %v432_v9, %v2131_v48 }
  0x62   : > { %v2321_v51 = vadd.f32 %v433_v42, %v2135_v62  ;;  %v2324_v46 = vadd.f32 %v434_v20, %v2139_v63  ;;  %v2327_v32 = vadd.f32 %v435_v56, %v2143_v2  ;;  %v2330_v6 = vadd.f32 %v436_v55, %v2147_v4  ;;  %v3735_v4 = vld [vmem:[#allocation13_spill] sm:$0xff]  ;;  %v3746_v20 = vld [vmem:[#allocation26_spill] sm:$0xff] }
  0x63   : > { %v2333_v41 = vadd.f32 %v437_v60, %v2151_v30  ;;  %v2336_v40 = vadd.f32 %v438_v61, %v2155_v28  ;;  %v2339_v9 = vadd.f32 %v439_v47, %v2159_v43  ;;  %v2342_v42 = vadd.f32 %v440_v1, %v2163_v35  ;;  %v3742_v35 = vld [vmem:[#allocation22_spill] sm:$0xff] }
  0x64   : > { %v2345_v14 = vadd.f32 %v441_v3, %v2167_v31  ;;  %v2348_v56 = vadd.f32 %v442_v8, %v2171_v38  ;;  %v2351_v59 = vadd.f32 %v443_v36, %v2175_v44  ;;  %v2354_v55 = vadd.f32 %v444_v33, %v2179_v58  ;;  %v3743_v31 = vld [vmem:[#allocation23_spill] sm:$0xff]  ;;  %v3744_v38 = vld [vmem:[#allocation24_spill] sm:$0xff]  ;;  %v3745_v44 = vld [vmem:[#allocation25_spill] sm:$0xff] }
  0x65   : > { %v2357_v49 = vadd.f32 %v445_v34, %v2183_v21  ;;  %v2360_v60 = vadd.f32 %v446_v27, %v2187_v26  ;;  %v2363_v48 = vadd.f32 %v447_v37, %v2191_v12  ;;  %v2366_v61 = vadd.f32 %v448_v39, %v2195_v16  ;;  %v3720_v26 = vld [vmem:[#allocation9_spill] sm:$0xff]  ;;  %v3722_v12 = vld [vmem:[#allocation75_spill] sm:$0xff]  ;;  %v3724_v16 = vld [vmem:[#allocation76_spill] sm:$0xff] }
  0x66   : > { %v2369_v62 = vadd.f32 %v449_v45, %v2199_v53  ;;  %v2372_v47 = vadd.f32 %v450_v11, %v2203_v18  ;;  %v2375_v58 = vadd.f32 %v451_v57, %v2207_v29  ;;  %v2378_v21 = vadd.f32 %v452_v7, %v2211_v24  ;;  %v3726_v53 = vld [vmem:[#allocation77_spill] sm:$0xff]  ;;  %v3728_v18 = vld [vmem:[#allocation78_spill] sm:$0xff]  ;;  %v3730_v29 = vld [vmem:[#allocation79_spill] sm:$0xff] }
  0x67   : > { %v2381_v63 = vadd.f32 %v453_v17, %v3720_v26  ;;  %v2384_v1 = vadd.f32 %v454_v25, %v3722_v12  ;;  %v2387_v2 = vadd.f32 %v455_v23, %v3724_v16  ;;  %v2390_v3 = vadd.f32 %v456_v19, %v3726_v53  ;;  %v3732_v24 = vld [vmem:[#allocation80_spill] sm:$0xff]  ;;  %v3734_v17 = vld [vmem:[#allocation11_spill] sm:$0xff]  ;;  %v3737_v23 = vld [vmem:[#allocation17_spill] sm:$0xff] }
  0x68   : > { %v2393_v11 = vadd.f32 %v457_v5, %v3728_v18  ;;  %v2396_v57 = vadd.f32 %v458_v22, %v3730_v29  ;;  %v2399_v7 = vadd.f32 %v459_v10, %v3732_v24  ;;  %v496_v8 = vmul.f32 %v3735_v4, %v3734_v17  ;;  %v3736_v25 = vld [vmem:[#allocation16_spill] sm:$0xff]  ;;  %v3738_v19 = vld [vmem:[#allocation18_spill] sm:$0xff]  ;;  %v3739_v5 = vld [vmem:[#allocation19_spill] sm:$0xff] }
  0x69   : > { %3721 = vst [vmem:[#allocation12_spill] sm:$0xff] %v2381_v63  ;;  %3723 = vst [vmem:[#allocation9_spill] sm:$0xff] %v2384_v1  ;;  %v497_v30 = vmul.f32 %v3735_v4, %v3736_v25  ;;  %v498_v36 = vmul.f32 %v3735_v4, %v3737_v23  ;;  %v499_v28 = vmul.f32 %v3735_v4, %v3738_v19  ;;  %v3740_v22 = vld [vmem:[#allocation20_spill] sm:$0xff]  ;;  %v3741_v10 = vld [vmem:[#allocation21_spill] sm:$0xff] }
  0x6a   : > { %3725 = vst [vmem:[#allocation75_spill] sm:$0xff] %v2387_v2  ;;  %3727 = vst [vmem:[#allocation76_spill] sm:$0xff] %v2390_v3  ;;  %v500_v33 = vmul.f32 %v3735_v4, %v3739_v5  ;;  %v501_v43 = vmul.f32 %v3735_v4, %v3740_v22  ;;  %v502_v34 = vmul.f32 %v3735_v4, %v3741_v10  ;;  %v3747_v12 = vld [vmem:[#allocation27_spill] sm:$0xff]  ;;  %v3748_v53 = vld [vmem:[#allocation28_spill] sm:$0xff] }
  0x6b   : > { %3729 = vst [vmem:[#allocation77_spill] sm:$0xff] %v2393_v11  ;;  %3731 = vst [vmem:[#allocation78_spill] sm:$0xff] %v2396_v57  ;;  %v503_v27 = vmul.f32 %v3735_v4, %v3742_v35  ;;  %v504_v37 = vmul.f32 %v3735_v4, %v3743_v31  ;;  %v505_v39 = vmul.f32 %v3735_v4, %v3744_v38  ;;  %v3749_v29 = vld [vmem:[#allocation29_spill] sm:$0xff]  ;;  %v3750_v35 = vld [vmem:[#allocation30_spill] sm:$0xff] }
  0x6c   : > { %3733 = vst [vmem:[#allocation79_spill] sm:$0xff] %v2399_v7  ;;  %v506_v45 = vmul.f32 %v3735_v4, %v3745_v44  ;;  %v507_v26 = vmul.f32 %v3735_v4, %v3746_v20  ;;  %v508_v16 = vmul.f32 %v3735_v4, %v3747_v12  ;;  %v509_v18 = vmul.f32 %v3735_v4, %v3748_v53  ;;  %v3751_v10 = vld [vmem:[#allocation31_spill] sm:$0xff]  ;;  %v3752_v22 = vld [vmem:[#allocation32_spill] sm:$0xff]  ;;  %v3753_v5 = vld [vmem:[#allocation33_spill] sm:$0xff] }
  0x6d   : > { %v510_v24 = vmul.f32 %v3735_v4, %v3749_v29  ;;  %v511_v31 = vmul.f32 %v3735_v4, %v3750_v35  ;;  %v512_v38 = vmul.f32 %v3735_v4, %v3751_v10  ;;  %v513_v44 = vmul.f32 %v3735_v4, %v3752_v22  ;;  %v3754_v19 = vld [vmem:[#allocation35_spill] sm:$0xff]  ;;  %v3755_v23 = vld [vmem:[#allocation36_spill] sm:$0xff]  ;;  %v3756_v25 = vld [vmem:[#allocation37_spill] sm:$0xff] }
  0x6e   : > { %v514_v20 = vmul.f32 %v3735_v4, %v3753_v5  ;;  %v515_v12 = vmul.f32 %v3735_v4, %v3754_v19  ;;  %v516_v53 = vmul.f32 %v3735_v4, %v3755_v23  ;;  %v517_v29 = vmul.f32 %v3735_v4, %v3756_v25  ;;  %v3757_v17 = vld [vmem:[#allocation41_spill] sm:$0xff]  ;;  %v3758_v7 = vld [vmem:[#allocation42_spill] sm:$0xff]  ;;  %v3759_v57 = vld [vmem:[#allocation43_spill] sm:$0xff] }
  0x6f   : > { %v518_v35 = vmul.f32 %v3735_v4, %v3757_v17  ;;  %v519_v10 = vmul.f32 %v3735_v4, %v3758_v7  ;;  %v520_v22 = vmul.f32 %v3735_v4, %v3759_v57  ;;  %v3760_v11 = vld [vmem:[#allocation47_spill] sm:$0xff]  ;;  %v3761_v3 = vld [vmem:[#allocation48_spill] sm:$0xff]  ;;  %v3762_v2 = vld [vmem:[#allocation49_spill] sm:$0xff]  ;;  %v525_v17 = vmul.f32 %v3735_v4, %v1852_v54 }
  0x70   : > { %v521_v5 = vmul.f32 %v3735_v4, %v3760_v11  ;;  %v522_v19 = vmul.f32 %v3735_v4, %v3761_v3  ;;  %v523_v23 = vmul.f32 %v3735_v4, %v3762_v2  ;;  %v3763_v1 = vld [vmem:[#allocation50_spill] sm:$0xff]  ;;  %v526_v7 = vmul.f32 0.0, %v3735_v4 }
  0x71   : > { %v524_v25 = vmul.f32 %v3735_v4, %v3763_v1  ;;  %v2463_v63 = vadd.f32 %v496_v8, %v2306_v0  ;;  %v2466_v57 = vadd.f32 %v497_v30, %v2309_v52  ;;  %v2469_v11 = vadd.f32 %v498_v36, %v2312_v13 }
  0x72   : > { %v2472_v3 = vadd.f32 %v499_v28, %v2315_v50  ;;  %v2475_v2 = vadd.f32 %v500_v33, %v2318_v15  ;;  %v2478_v1 = vadd.f32 %v501_v43, %v2321_v51  ;;  %v2481_v4 = vadd.f32 %v502_v34, %v2324_v46 }
  0x73   : > { %3764 = vst [vmem:[#allocation80_spill] sm:$0xff] %v2463_v63  ;;  %3765 = vst [vmem:[#allocation13_spill] sm:$0xff] %v2466_v57  ;;  %v2484_v0 = vadd.f32 %v503_v27, %v2327_v32  ;;  %v2487_v52 = vadd.f32 %v504_v37, %v2330_v6  ;;  %v2490_v13 = vadd.f32 %v505_v39, %v2333_v41  ;;  %v3807_v27 = vld [vmem:[#allocation16_spill] sm:$0xff]  ;;  %v3841_v63 = vld [vmem:[#allocation15_spill] sm:$0xff] }
  0x74   : > { %3766 = vst [vmem:[#allocation81_spill] sm:$0xff] %v2469_v11  ;;  %3767 = vst [vmem:[#allocation82_spill] sm:$0xff] %v2472_v3  ;;  %v2493_v50 = vadd.f32 %v506_v45, %v2336_v40  ;;  %v2496_v15 = vadd.f32 %v507_v26, %v2339_v9  ;;  %v2499_v51 = vadd.f32 %v508_v16, %v2342_v42  ;;  %v3839_v11 = vld [vmem:[#allocation49_spill] sm:$0xff] }
  0x75   : > { %3768 = vst [vmem:[#allocation83_spill] sm:$0xff] %v2475_v2  ;;  %3769 = vst [vmem:[#allocation84_spill] sm:$0xff] %v2478_v1  ;;  %v2502_v46 = vadd.f32 %v509_v18, %v2345_v14  ;;  %v2505_v32 = vadd.f32 %v510_v24, %v2348_v56  ;;  %v2508_v6 = vadd.f32 %v511_v31, %v2351_v59  ;;  %v3837_v2 = vld [vmem:[#allocation48_spill] sm:$0xff] }
  0x76   : > { %3770 = vst [vmem:[#allocation85_spill] sm:$0xff] %v2481_v4  ;;  %3771 = vst [vmem:[#allocation86_spill] sm:$0xff] %v2484_v0  ;;  %v2511_v41 = vadd.f32 %v512_v38, %v2354_v55  ;;  %v2514_v40 = vadd.f32 %v513_v44, %v2357_v49  ;;  %v2517_v9 = vadd.f32 %v514_v20, %v2360_v60  ;;  %v3789_v60 = vld [vmem:[#allocation12_spill] sm:$0xff]  ;;  %v3809_v38 = vld [vmem:[#allocation18_spill] sm:$0xff] }
  0x77   : > { %3772 = vst [vmem:[#allocation87_spill] sm:$0xff] %v2487_v52  ;;  %3773 = vst [vmem:[#allocation88_spill] sm:$0xff] %v2490_v13  ;;  %v2520_v42 = vadd.f32 %v515_v12, %v2363_v48  ;;  %v2523_v14 = vadd.f32 %v516_v53, %v2366_v61  ;;  %v2526_v56 = vadd.f32 %v517_v29, %v2369_v62  ;;  %v3791_v48 = vld [vmem:[#allocation9_spill] sm:$0xff]  ;;  %v3793_v61 = vld [vmem:[#allocation75_spill] sm:$0xff] }
  0x78   : > { %3774 = vst [vmem:[#allocation89_spill] sm:$0xff] %v2493_v50  ;;  %3775 = vst [vmem:[#allocation90_spill] sm:$0xff] %v2496_v15  ;;  %v2529_v59 = vadd.f32 %v518_v35, %v2372_v47  ;;  %v2532_v55 = vadd.f32 %v519_v10, %v2375_v58  ;;  %v2535_v49 = vadd.f32 %v520_v22, %v2378_v21  ;;  %v3795_v62 = vld [vmem:[#allocation76_spill] sm:$0xff]  ;;  %v3797_v47 = vld [vmem:[#allocation77_spill] sm:$0xff] }
  0x79   : > { %3776 = vst [vmem:[#allocation91_spill] sm:$0xff] %v2499_v51  ;;  %3777 = vst [vmem:[#allocation92_spill] sm:$0xff] %v2502_v46  ;;  %v2538_v8 = vadd.f32 %v521_v5, %v3789_v60  ;;  %v2541_v30 = vadd.f32 %v522_v19, %v3791_v48  ;;  %v2544_v36 = vadd.f32 %v523_v23, %v3793_v61  ;;  %v3799_v58 = vld [vmem:[#allocation78_spill] sm:$0xff]  ;;  %v3801_v21 = vld [vmem:[#allocation79_spill] sm:$0xff] }
  0x7a   : > { %3778 = vst [vmem:[#allocation93_spill] sm:$0xff] %v2505_v32  ;;  %3779 = vst [vmem:[#allocation94_spill] sm:$0xff] %v2508_v6  ;;  %v2547_v28 = vadd.f32 %v524_v25, %v3795_v62  ;;  %v2550_v33 = vadd.f32 %v525_v17, %v3797_v47  ;;  %v2553_v43 = vadd.f32 %v526_v7, %v3799_v58  ;;  %v3803_v5 = vld [vmem:[#allocation14_spill] sm:$0xff]  ;;  %v3804_v19 = vld [vmem:[#allocation7_spill] sm:$0xff] }
  0x7b   : > { %3780 = vst [vmem:[#allocation95_spill] sm:$0xff] %v2511_v41  ;;  %3781 = vst [vmem:[#allocation96_spill] sm:$0xff] %v2514_v40  ;;  %v2556_v22 = vadd.f32 %v526_v7, %v3801_v21  ;;  %v2559_v10 = vmul.f32 0.0, %v3803_v5  ;;  %v2563_v34 = vmul.f32 %v3803_v5, %v3804_v19  ;;  %v3805_v23 = vld [vmem:[#allocation10_spill] sm:$0xff]  ;;  %v3806_v35 = vld [vmem:[#allocation11_spill] sm:$0xff]  ;;  %v2575_v31 = vmul.f32 %v3803_v5, %v3807_v27 }
  0x7c   : > { %3782 = vst [vmem:[#allocation97_spill] sm:$0xff] %v2517_v9  ;;  %3783 = vst [vmem:[#allocation98_spill] sm:$0xff] %v2520_v42  ;;  %v2567_v25 = vmul.f32 %v3803_v5, %v3805_v23  ;;  %v2571_v17 = vmul.f32 %v3803_v5, %v3806_v35  ;;  %v3808_v7 = vld [vmem:[#allocation17_spill] sm:$0xff]  ;;  %v2583_v39 = vmul.f32 %v3803_v5, %v3809_v38  ;;  %v3810_v44 = vld [vmem:[#allocation19_spill] sm:$0xff] }
  0x7d   : > { %3784 = vst [vmem:[#allocation99_spill] sm:$0xff] %v2523_v14  ;;  %3785 = vst [vmem:[#allocation100_spill] sm:$0xff] %v2526_v56  ;;  %v2579_v37 = vmul.f32 %v3803_v5, %v3808_v7  ;;  %v2587_v45 = vmul.f32 %v3803_v5, %v3810_v44  ;;  %v3811_v20 = vld [vmem:[#allocation20_spill] sm:$0xff]  ;;  %v3812_v12 = vld [vmem:[#allocation21_spill] sm:$0xff]  ;;  %v2675_v3 = vmul.f32 %v3803_v5, %v3837_v2 }
  0x7e   : > { %3786 = vst [vmem:[#allocation101_spill] sm:$0xff] %v2529_v59  ;;  %3787 = vst [vmem:[#allocation102_spill] sm:$0xff] %v2532_v55  ;;  %v2591_v26 = vmul.f32 %v3803_v5, %v3811_v20  ;;  %v2595_v16 = vmul.f32 %v3803_v5, %v3812_v12  ;;  %v3813_v53 = vld [vmem:[#allocation22_spill] sm:$0xff]  ;;  %v3814_v29 = vld [vmem:[#allocation23_spill] sm:$0xff]  ;;  %v2679_v57 = vmul.f32 %v3803_v5, %v3839_v11 }
  0x7f   : > { %3788 = vst [vmem:[#allocation103_spill] sm:$0xff] %v2535_v49  ;;  %3790 = vst [vmem:[#allocation12_spill] sm:$0xff] %v2538_v8  ;;  %v2599_v18 = vmul.f32 %v3803_v5, %v3813_v53  ;;  %v2603_v24 = vmul.f32 %v3803_v5, %v3814_v29  ;;  %v3815_v60 = vld [vmem:[#allocation24_spill] sm:$0xff]  ;;  %v3816_v61 = vld [vmem:[#allocation25_spill] sm:$0xff] }
  0x80   : > { %3792 = vst [vmem:[#allocation9_spill] sm:$0xff] %v2541_v30  ;;  %3794 = vst [vmem:[#allocation75_spill] sm:$0xff] %v2544_v36  ;;  %v2607_v48 = vmul.f32 %v3803_v5, %v3815_v60  ;;  %v2611_v62 = vmul.f32 %v3803_v5, %v3816_v61  ;;  %v3817_v47 = vld [vmem:[#allocation26_spill] sm:$0xff]  ;;  %v3818_v21 = vld [vmem:[#allocation27_spill] sm:$0xff] }
  0x81   : > { %3796 = vst [vmem:[#allocation76_spill] sm:$0xff] %v2547_v28  ;;  %3798 = vst [vmem:[#allocation77_spill] sm:$0xff] %v2550_v33  ;;  %v2615_v58 = vmul.f32 %v3803_v5, %v3817_v47  ;;  %v3820_v28 = vld [vmem:[#allocation29_spill] sm:$0xff]  ;;  %v3821_v30 = vld [vmem:[#allocation30_spill] sm:$0xff] }
  0x82   : > { %3800 = vst [vmem:[#allocation78_spill] sm:$0xff] %v2553_v43  ;;  %3802 = vst [vmem:[#allocation79_spill] sm:$0xff] %v2556_v22  ;;  %v2619_v22 = vmul.f32 %v3803_v5, %v3818_v21  ;;  %v3819_v43 = vld [vmem:[#allocation28_spill] sm:$0xff]  ;;  %v2627_v36 = vmul.f32 %v3803_v5, %v3820_v28  ;;  %v2631_v8 = vmul.f32 %v3803_v5, %v3821_v30  ;;  %v3822_v49 = vld [vmem:[#allocation31_spill] sm:$0xff] }
  0x83   : > { %v2623_v33 = vmul.f32 %v3803_v5, %v3819_v43  ;;  %v2635_v55 = vmul.f32 %v3803_v5, %v3822_v49  ;;  %v3823_v59 = vld [vmem:[#allocation32_spill] sm:$0xff]  ;;  %v3824_v14 = vld [vmem:[#allocation33_spill] sm:$0xff]  ;;  %v3825_v9 = vld [vmem:[#allocation35_spill] sm:$0xff]  ;;  %3838 = vst [vmem:[#allocation106_spill] sm:$0xff] %v2675_v3  ;;  %v603_v3 = vmul.f32 %v3841_v63, %v3809_v38  ;;  %v610_v38 = vmul.f32 %v3841_v63, %v3816_v61 }
  0x84   : > { %v2639_v56 = vmul.f32 %v3803_v5, %v3823_v59  ;;  %v2643_v42 = vmul.f32 %v3803_v5, %v3824_v14  ;;  %v2647_v40 = vmul.f32 %v3803_v5, %v3825_v9  ;;  %v3826_v41 = vld [vmem:[#allocation36_spill] sm:$0xff]  ;;  %v3827_v32 = vld [vmem:[#allocation37_spill] sm:$0xff]  ;;  %v3831_v50 = vld [vmem:[#allocation42_spill] sm:$0xff]  ;;  %3840 = vst [vmem:[#allocation107_spill] sm:$0xff] %v2679_v57  ;;  %v617_v61 = vmul.f32 %v3841_v63, %v3823_v59 }
  0x85   : > { %v2651_v6 = vmul.f32 %v3803_v5, %v3826_v41  ;;  %v2655_v46 = vmul.f32 %v3803_v5, %v3827_v32  ;;  %v3829_v51 = vld [vmem:[#allocation41_spill] sm:$0xff]  ;;  %v2663_v13 = vmul.f32 %v3803_v5, %v3831_v50  ;;  %v3833_v52 = vld [vmem:[#allocation43_spill] sm:$0xff]  ;;  %v3842_v57 = vld [vmem:[#allocation50_spill] sm:$0xff] }
  0x86   : > { %v2659_v15 = vmul.f32 %v3803_v5, %v3829_v51  ;;  %v2667_v0 = vmul.f32 %v3803_v5, %v3833_v52  ;;  %v3835_v4 = vld [vmem:[#allocation47_spill] sm:$0xff]  ;;  %v624_v59 = vmul.f32 %v3841_v63, %v3833_v52 }
  0x87   : > { %3828 = vst [vmem:[#allocation14_spill] sm:$0xff] %v2655_v46  ;;  %3832 = vst [vmem:[#allocation10_spill] sm:$0xff] %v2663_v13  ;;  %v2671_v1 = vmul.f32 %v3803_v5, %v3835_v4  ;;  %v599_v13 = vmul.f32 %v3841_v63, %v3805_v23  ;;  %v602_v46 = vmul.f32 %v3841_v63, %v3808_v7 }
  0x88   : > { %3830 = vst [vmem:[#allocation7_spill] sm:$0xff] %v2659_v15  ;;  %3834 = vst [vmem:[#allocation104_spill] sm:$0xff] %v2667_v0  ;;  %v598_v15 = vmul.f32 %v3841_v63, %v3804_v19  ;;  %v600_v0 = vmul.f32 %v3841_v63, %v3806_v35  ;;  %v604_v5 = vmul.f32 %v3841_v63, %v3810_v44 }
  0x89   : > { %3836 = vst [vmem:[#allocation105_spill] sm:$0xff] %v2671_v1  ;;  %v601_v1 = vmul.f32 %v3841_v63, %v3807_v27  ;;  %v605_v19 = vmul.f32 %v3841_v63, %v3811_v20  ;;  %v606_v23 = vmul.f32 %v3841_v63, %v3812_v12  ;;  %v607_v35 = vmul.f32 %v3841_v63, %v3813_v53 }
  0x8a   : > { %v608_v27 = vmul.f32 %v3841_v63, %v3814_v29  ;;  %v609_v7 = vmul.f32 %v3841_v63, %v3815_v60  ;;  %v611_v44 = vmul.f32 %v3841_v63, %v3817_v47  ;;  %v612_v20 = vmul.f32 %v3841_v63, %v3818_v21 }
  0x8b   : > { %v613_v12 = vmul.f32 %v3841_v63, %v3819_v43  ;;  %v614_v53 = vmul.f32 %v3841_v63, %v3820_v28  ;;  %v615_v29 = vmul.f32 %v3841_v63, %v3821_v30  ;;  %v616_v60 = vmul.f32 %v3841_v63, %v3822_v49 }
  0x8c   : > { %v618_v47 = vmul.f32 %v3841_v63, %v3824_v14  ;;  %v619_v21 = vmul.f32 %v3841_v63, %v3825_v9  ;;  %v620_v43 = vmul.f32 %v3841_v63, %v3826_v41  ;;  %v621_v28 = vmul.f32 %v3841_v63, %v3827_v32 }
  0x8d   : > { %v622_v30 = vmul.f32 %v3841_v63, %v3829_v51  ;;  %v623_v49 = vmul.f32 %v3841_v63, %v3831_v50  ;;  %v625_v14 = vmul.f32 %v3841_v63, %v3835_v4  ;;  %v626_v9 = vmul.f32 %v3841_v63, %v3837_v2 }
  0x8e   : > { %v627_v41 = vmul.f32 %v3841_v63, %v3839_v11  ;;  %v628_v32 = vmul.f32 %v3841_v63, %v3842_v57  ;;  %v629_v51 = vmul.f32 %v3841_v63, %v1852_v54  ;;  %v2746_v50 = vadd.f32 %v598_v15, %v2559_v10 }
  0x8f   : > { %v2749_v52 = vadd.f32 %v599_v13, %v2559_v10  ;;  %v2752_v4 = vadd.f32 %v600_v0, %v2563_v34  ;;  %v2755_v2 = vadd.f32 %v601_v1, %v2567_v25  ;;  %v2758_v11 = vadd.f32 %v602_v46, %v2571_v17 }
  0x90   : > { %v2761_v57 = vadd.f32 %v603_v3, %v2575_v31  ;;  %v2764_v63 = vadd.f32 %v604_v5, %v2579_v37  ;;  %v2767_v15 = vadd.f32 %v605_v19, %v2583_v39  ;;  %v2770_v13 = vadd.f32 %v606_v23, %v2587_v45  ;;  %v3845_v39 = vld [vmem:[#allocation5_spill] sm:$0xff] }
  0x91   : > { %v2773_v0 = vadd.f32 %v607_v35, %v2591_v26  ;;  %v2776_v1 = vadd.f32 %v608_v27, %v2595_v16  ;;  %v2779_v46 = vadd.f32 %v609_v7, %v2599_v18  ;;  %v2782_v3 = vadd.f32 %v610_v38, %v2603_v24  ;;  %v3871_v23 = vld [vmem:[#allocation21_spill] sm:$0xff]  ;;  %v3877_v24 = vld [vmem:[#allocation27_spill] sm:$0xff] }
  0x92   : > { %v2785_v10 = vadd.f32 %v611_v44, %v2607_v48  ;;  %v2788_v34 = vadd.f32 %v612_v20, %v2611_v62  ;;  %v2791_v25 = vadd.f32 %v613_v12, %v2615_v58  ;;  %v2794_v35 = vadd.f32 %v614_v53, %v2619_v22  ;;  %v3857_v12 = vld [vmem:[#allocation106_spill] sm:$0xff]  ;;  %v3865_v48 = vld [vmem:[#allocation11_spill] sm:$0xff]  ;;  %v3879_v53 = vld [vmem:[#allocation29_spill] sm:$0xff] }
  0x93   : > { %v2797_v17 = vadd.f32 %v615_v29, %v2623_v33  ;;  %v2800_v27 = vadd.f32 %v616_v60, %v2627_v36  ;;  %v2803_v31 = vadd.f32 %v617_v61, %v2631_v8  ;;  %v2806_v7 = vadd.f32 %v618_v47, %v2635_v55  ;;  %v3844_v33 = vld [vmem:[#allocation6_spill] sm:$0xff]  ;;  %v3849_v55 = vld [vmem:[#allocation7_spill] sm:$0xff]  ;;  %v3866_v61 = vld [vmem:[#allocation16_spill] sm:$0xff] }
  0x94   : > { %v2809_v37 = vadd.f32 %v619_v21, %v2639_v56  ;;  %v2812_v38 = vadd.f32 %v620_v43, %v2643_v42  ;;  %v2815_v22 = vadd.f32 %v621_v28, %v2647_v40  ;;  %v665_v44 = vrot.slane %v3845_v39, %v3844_v33  ;;  %v3847_v8 = vld [vmem:[#allocation14_spill] sm:$0xff]  ;;  %v3853_v42 = vld [vmem:[#allocation104_spill] sm:$0xff]  ;;  %v3855_v40 = vld [vmem:[#allocation105_spill] sm:$0xff] }
  0x95   : > { %v2820_v36 = vadd.f32 %v622_v30, %v2651_v6  ;;  %v2823_v45 = vadd.f32 %v623_v49, %v3847_v8  ;;  %v2826_v20 = vadd.f32 %v624_v59, %v3849_v55  ;;  %v3851_v56 = vld [vmem:[#allocation10_spill] sm:$0xff]  ;;  %v2832_v43 = vadd.f32 %v626_v9, %v3853_v42  ;;  %v3859_v6 = vld [vmem:[#allocation107_spill] sm:$0xff]  ;;  %v3874_v42 = vld [vmem:[#allocation24_spill] sm:$0xff] }
  0x96   : > { %3843 = vst [vmem:[#allocation15_spill] sm:$0xff] %v2815_v22  ;;  %v2829_v26 = vadd.f32 %v625_v14, %v3851_v56  ;;  %v2835_v28 = vadd.f32 %v627_v41, %v3855_v40  ;;  %v2838_v16 = vadd.f32 %v628_v32, %v3857_v12  ;;  %v2841_v30 = vadd.f32 %v629_v51, %v3859_v6  ;;  %v3867_v41 = vld [vmem:[#allocation17_spill] sm:$0xff]  ;;  %v3868_v58 = vld [vmem:[#allocation18_spill] sm:$0xff]  ;;  %v3869_v21 = vld [vmem:[#allocation19_spill] sm:$0xff] }
  0x97   : > { %3846 = vst [vmem:[#allocation6_spill] sm:$0xff] %v2820_v36  ;;  %3848 = vst [vmem:[#allocation5_spill] sm:$0xff] %v2823_v45  ;;  %v666_v9 = vmul.f32 %v665_v44, %v3865_v48  ;;  %v667_v62 = vmul.f32 %v665_v44, %v3866_v61  ;;  %v668_v47 = vmul.f32 %v665_v44, %v3867_v41  ;;  %v3870_v51 = vld [vmem:[#allocation20_spill] sm:$0xff]  ;;  %v3872_v39 = vld [vmem:[#allocation22_spill] sm:$0xff] }
  0x98   : > { %3850 = vst [vmem:[#allocation14_spill] sm:$0xff] %v2826_v20  ;;  %3852 = vst [vmem:[#allocation7_spill] sm:$0xff] %v2829_v26  ;;  %v669_v32 = vmul.f32 %v665_v44, %v3868_v58  ;;  %v670_v5 = vmul.f32 %v665_v44, %v3869_v21  ;;  %v671_v19 = vmul.f32 %v665_v44, %v3870_v51  ;;  %v3873_v55 = vld [vmem:[#allocation23_spill] sm:$0xff]  ;;  %v3875_v12 = vld [vmem:[#allocation25_spill] sm:$0xff] }
  0x99   : > { %3854 = vst [vmem:[#allocation10_spill] sm:$0xff] %v2832_v43  ;;  %3856 = vst [vmem:[#allocation104_spill] sm:$0xff] %v2835_v28  ;;  %v672_v33 = vmul.f32 %v665_v44, %v3871_v23  ;;  %v673_v8 = vmul.f32 %v665_v44, %v3872_v39  ;;  %v674_v56 = vmul.f32 %v665_v44, %v3873_v55  ;;  %v3876_v48 = vld [vmem:[#allocation26_spill] sm:$0xff]  ;;  %v3878_v60 = vld [vmem:[#allocation28_spill] sm:$0xff] }
  0x9a   : > { %3858 = vst [vmem:[#allocation105_spill] sm:$0xff] %v2838_v16  ;;  %3860 = vst [vmem:[#allocation106_spill] sm:$0xff] %v2841_v30  ;;  %v675_v40 = vmul.f32 %v665_v44, %v3874_v42  ;;  %v676_v6 = vmul.f32 %v665_v44, %v3875_v12  ;;  %v677_v61 = vmul.f32 %v665_v44, %v3876_v48  ;;  %v3880_v59 = vld [vmem:[#allocation30_spill] sm:$0xff]  ;;  %v3881_v29 = vld [vmem:[#allocation31_spill] sm:$0xff] }
  0x9b   : > { %v678_v41 = vmul.f32 %v665_v44, %v3877_v24  ;;  %v679_v58 = vmul.f32 %v665_v44, %v3878_v60  ;;  %v680_v21 = vmul.f32 %v665_v44, %v3879_v53  ;;  %v681_v51 = vmul.f32 %v665_v44, %v3880_v59  ;;  %v3882_v14 = vld [vmem:[#allocation32_spill] sm:$0xff]  ;;  %v3883_v49 = vld [vmem:[#allocation33_spill] sm:$0xff]  ;;  %v3884_v18 = vld [vmem:[#allocation35_spill] sm:$0xff] }
  0x9c   : > { %v682_v23 = vmul.f32 %v665_v44, %v3881_v29  ;;  %v683_v39 = vmul.f32 %v665_v44, %v3882_v14  ;;  %v684_v55 = vmul.f32 %v665_v44, %v3883_v49  ;;  %v685_v42 = vmul.f32 %v665_v44, %v3884_v18  ;;  %v3885_v30 = vld [vmem:[#allocation36_spill] sm:$0xff]  ;;  %v3886_v16 = vld [vmem:[#allocation37_spill] sm:$0xff]  ;;  %v3888_v43 = vld [vmem:[#allocation42_spill] sm:$0xff] }
  0x9d   : > { %v686_v12 = vmul.f32 %v665_v44, %v3885_v30  ;;  %v687_v48 = vmul.f32 %v665_v44, %v3886_v16  ;;  %v3887_v28 = vld [vmem:[#allocation41_spill] sm:$0xff]  ;;  %v689_v60 = vmul.f32 %v665_v44, %v3888_v43  ;;  %v3889_v53 = vld [vmem:[#allocation43_spill] sm:$0xff]  ;;  %v3891_v29 = vld [vmem:[#allocation48_spill] sm:$0xff]  ;;  %v695_v18 = vmul.f32 %v665_v44, %v1852_v54 }
  0x9e   : > { %v688_v24 = vmul.f32 %v665_v44, %v3887_v28  ;;  %v690_v26 = vmul.f32 %v665_v44, %v3889_v53  ;;  %v3890_v59 = vld [vmem:[#allocation47_spill] sm:$0xff]  ;;  %v692_v45 = vmul.f32 %v665_v44, %v3891_v29  ;;  %v3892_v14 = vld [vmem:[#allocation49_spill] sm:$0xff]  ;;  %v3893_v49 = vld [vmem:[#allocation50_spill] sm:$0xff]  ;;  %v696_v30 = vmul.f32 0.0, %v665_v44 }
  0x9f   : > { %v691_v20 = vmul.f32 %v665_v44, %v3890_v59  ;;  %v693_v36 = vmul.f32 %v665_v44, %v3892_v14  ;;  %v694_v22 = vmul.f32 %v665_v44, %v3893_v49  ;;  %v2878_v16 = vadd.f32 %v666_v9, %v2746_v50  ;;  %v3919_v14 = vld [vmem:[#allocation63_spill] sm:$0xff] }
  0xa0   : > { %v2881_v28 = vadd.f32 %v667_v62, %v2749_v52  ;;  %v2884_v43 = vadd.f32 %v668_v47, %v2752_v4  ;;  %v2887_v53 = vadd.f32 %v669_v32, %v2755_v2  ;;  %v2890_v59 = vadd.f32 %v670_v5, %v2758_v11 }
  0xa1   : > { %v2893_v29 = vadd.f32 %v671_v19, %v2761_v57  ;;  %v2896_v54 = vadd.f32 %v672_v33, %v2764_v63  ;;  %v2899_v50 = vadd.f32 %v673_v8, %v2767_v15  ;;  %v2902_v52 = vadd.f32 %v674_v56, %v2770_v13  ;;  %v3901_v19 = vld [vmem:[#allocation10_spill] sm:$0xff]  ;;  %v3903_v33 = vld [vmem:[#allocation104_spill] sm:$0xff]  ;;  %v3905_v56 = vld [vmem:[#allocation57_spill] sm:$0xff] }
  0xa2   : > { %v2905_v4 = vadd.f32 %v675_v40, %v2773_v0  ;;  %v2908_v2 = vadd.f32 %v676_v6, %v2776_v1  ;;  %v2911_v11 = vadd.f32 %v677_v61, %v2779_v46  ;;  %v2914_v57 = vadd.f32 %v678_v41, %v2782_v3  ;;  %v3906_v40 = vld [vmem:[#allocation59_spill] sm:$0xff] }
  0xa3   : > { %v2917_v63 = vadd.f32 %v679_v58, %v2785_v10  ;;  %v2920_v15 = vadd.f32 %v680_v21, %v2788_v34  ;;  %v2923_v13 = vadd.f32 %v681_v51, %v2791_v25  ;;  %v2926_v0 = vadd.f32 %v682_v23, %v2794_v35  ;;  %v3894_v35 = vld [vmem:[#allocation15_spill] sm:$0xff]  ;;  %v3913_v21 = vld [vmem:[#allocation8_spill] sm:$0xff]  ;;  %v3915_v23 = vld [vmem:[#allocation54_spill] sm:$0xff] }
  0xa4   : > { %v2929_v1 = vadd.f32 %v683_v39, %v2797_v17  ;;  %v2932_v46 = vadd.f32 %v684_v55, %v2800_v27  ;;  %v2935_v3 = vadd.f32 %v685_v42, %v2803_v31  ;;  %v2938_v10 = vadd.f32 %v686_v12, %v2806_v7  ;;  %v3895_v17 = vld [vmem:[#allocation6_spill] sm:$0xff]  ;;  %v3896_v27 = vld [vmem:[#allocation5_spill] sm:$0xff]  ;;  %v3898_v7 = vld [vmem:[#allocation7_spill] sm:$0xff] }
  0xa5   : > { %v2941_v34 = vadd.f32 %v687_v48, %v2809_v37  ;;  %v2944_v25 = vadd.f32 %v688_v24, %v2812_v38  ;;  %v2947_v44 = vadd.f32 %v689_v60, %v3894_v35  ;;  %v2950_v9 = vadd.f32 %v690_v26, %v3895_v17  ;;  %v3897_v31 = vld [vmem:[#allocation14_spill] sm:$0xff]  ;;  %v3900_v37 = vld [vmem:[#allocation55_spill] sm:$0xff]  ;;  %v3916_v55 = vld [vmem:[#allocation56_spill] sm:$0xff] }
  0xa6   : > { %v2953_v62 = vadd.f32 %v691_v20, %v3896_v27  ;;  %v2956_v47 = vadd.f32 %v692_v45, %v3897_v31  ;;  %v2959_v32 = vadd.f32 %v693_v36, %v3898_v7  ;;  %v769_v5 = vrot.slane %v3900_v37, 7  ;;  %v3907_v20 = vld [vmem:[#allocation105_spill] sm:$0xff]  ;;  %v3909_v45 = vld [vmem:[#allocation106_spill] sm:$0xff]  ;;  %v3911_v36 = vld [vmem:[#allocation51_spill] sm:$0xff] }
  0xa7   : > { %v2963_v38 = vadd.f32 %v694_v22, %v3901_v19  ;;  %v2966_v8 = vadd.f32 %v695_v18, %v3903_v33  ;;  %v772_v26 = vrot.slane %v3905_v56, 7  ;;  %v775_v6 = vrot.slane %v3906_v40, 7  ;;  %v3917_v12 = vld [vmem:[#allocation58_spill] sm:$0xff]  ;;  %v3918_v24 = vld [vmem:[#allocation61_spill] sm:$0xff]  ;;  %v3922_v35 = vld [vmem:[#allocation52_spill] sm:$0xff] }
  0xa8   : > { %3899 = vst [vmem:[#allocation107_spill] sm:$0xff] %v2959_v32  ;;  %v2971_v61 = vadd.f32 %v696_v30, %v3907_v20  ;;  %v2974_v41 = vadd.f32 %v696_v30, %v3909_v45  ;;  %v3912_v58 = vrot.slane %v3911_v36, 7  ;;  %v3914_v51 = vrot.slane %v3913_v21, 7  ;;  %v3920_v18 = vld [vmem:[#allocation53_spill] sm:$0xff]  ;;  %v3924_v7 = vld [vmem:[#allocation60_spill] sm:$0xff]  ;;  %v3925_v19 = vld [vmem:[#allocation62_spill] sm:$0xff] }
  0xa9   : > { %3902 = vst [vmem:[#allocation11_spill] sm:$0xff] %v2963_v38  ;;  %3904 = vst [vmem:[#allocation16_spill] sm:$0xff] %v2966_v8  ;;  %v768_v39 = vrot.slane %v3915_v23, 7  ;;  %v771_v42 = vrot.slane %v3916_v55, 7  ;;  %v774_v48 = vrot.slane %v3917_v12, 7  ;;  %v778_v60 = vrot.slane %v3918_v24, 7 }
  0xaa   : > { %3908 = vst [vmem:[#allocation17_spill] sm:$0xff] %v2971_v61  ;;  %3910 = vst [vmem:[#allocation18_spill] sm:$0xff] %v2974_v41  ;;  %v2981_v22 = vsel %vm761_vm0, %v3914_v51, %v3912_v58  ;;  %v781_v49 = vrot.slane %v3919_v14, 7  ;;  %v3921_v30 = vrot.slane %v3920_v18, 7  ;;  %v3923_v17 = vrot.slane %v3922_v35, 7  ;;  %v3926_v20 = vld [vmem:[#allocation65_spill] sm:$0xff] }
  0xab   : > { %v2996_v31 = vsel %vm761_vm0, %v768_v39, %v769_v5  ;;  %v777_v37 = vrot.slane %v3924_v7, 7  ;;  %v780_v33 = vrot.slane %v3925_v19, 7  ;;  %v3001_v56 = vsel %vm761_vm0, %v771_v42, %v772_v26  ;;  %v3927_v36 = vld [vmem:[#allocation67_spill] sm:$0xff]  ;;  %v3928_v51 = vld [vmem:[#allocation64_spill] sm:$0xff]  ;;  %v3929_v55 = vld [vmem:[#allocation69_spill] sm:$0xff] }
  0xac   : > { %v2993_v27 = vsel %vm761_vm0, %v3923_v17, %v3921_v30  ;;  %v3004_v40 = vsel %vm761_vm0, %v774_v48, %v775_v6  ;;  %v784_v45 = vrot.slane %v3926_v20, 7  ;;  %v787_v58 = vrot.slane %v3927_v36, 7  ;;  %v3930_v5 = vld [vmem:[#allocation71_spill] sm:$0xff]  ;;  %v3931_v14 = vld [vmem:[#allocation73_spill] sm:$0xff]  ;;  %v3933_v6 = vld [vmem:[#allocation66_spill] sm:$0xff] }
  0xad   : > { %v783_v23 = vrot.slane %v3928_v51, 7  ;;  %v790_v12 = vrot.slane %v3929_v55, 7  ;;  %v793_v24 = vrot.slane %v3930_v5, 7  ;;  %v796_v18 = vrot.slane %v3931_v14, 7  ;;  %v3934_v7 = vld [vmem:[#allocation34_spill] sm:$0xff]  ;;  %v3935_v20 = vld [vmem:[#allocation68_spill] sm:$0xff] }
  0xae   : > { %v3013_v30 = vsel %vm761_vm0, %v777_v37, %v778_v60  ;;  %v3016_v26 = vsel %vm761_vm0, %v780_v33, %v781_v49  ;;  %v786_v17 = vrot.slane %v3933_v6, 7  ;;  %v799_v19 = vrot.slane %v3934_v7, 7  ;;  %v3936_v41 = vld [vmem:[#allocation70_spill] sm:$0xff]  ;;  %v3937_v61 = vld [vmem:[#allocation72_spill] sm:$0xff]  ;;  %v3938_v8 = vld [vmem:[#allocation39_spill] sm:$0xff] }
  0xaf   : > { %3932 = vst [vmem:[#allocation19_spill] sm:$0xff] %v3016_v26  ;;  %v789_v36 = vrot.slane %v3935_v20, 7  ;;  %v792_v51 = vrot.slane %v3936_v41, 7  ;;  %v795_v55 = vrot.slane %v3937_v61, 7  ;;  %v802_v5 = vrot.slane %v3938_v8, 7  ;;  %v3941_v49 = vld [vmem:[#allocation74_spill] sm:$0xff] }
  0xb0   : > { %v3025_v14 = vsel %vm761_vm0, %v783_v23, %v784_v45  ;;  %v3028_v60 = vsel %vm761_vm0, %v786_v17, %v787_v58  ;;  %v798_v38 = vrot.slane %v3941_v49, 7  ;;  %v3942_v26 = vld [vmem:[#allocation44_spill] sm:$0xff]  ;;  %v3944_v8 = vld [vmem:[#allocation38_spill] sm:$0xff] }
  0xb1   : > { %3939 = vst [vmem:[#allocation20_spill] sm:$0xff] %v3025_v14  ;;  %3940 = vst [vmem:[#allocation21_spill] sm:$0xff] %v3028_v60  ;;  %v805_v6 = vrot.slane %v3942_v26, 7  ;;  %v3033_v7 = vsel %vm761_vm0, %v789_v36, %v790_v12  ;;  %v3036_v20 = vsel %vm761_vm0, %v792_v51, %v793_v24  ;;  %v3039_v61 = vsel %vm761_vm0, %v795_v55, %v796_v18  ;;  %v3946_v58 = vld [vmem:[#allocation40_spill] sm:$0xff]  ;;  %v3947_v14 = vld [vmem:[#allocation45_spill] sm:$0xff] }
  0xb2   : > { %3943 = vst [vmem:[#allocation22_spill] sm:$0xff] %v3036_v20  ;;  %v801_v41 = vrot.slane %v3944_v8, 7  ;;  %v3043_v45 = vsel %vm761_vm0, %v798_v38, %v799_v19  ;;  %v804_v60 = vrot.slane %v3946_v58, 7  ;;  %v3950_v24 = vrot.slane %v3913_v21, 7 }
  0xb3   : > { %3945 = vst [vmem:[#allocation23_spill] sm:$0xff] %v3043_v45  ;;  %v3951_v18 = vrot.slane %v3922_v35, 7  ;;  %v844_v19 = vsel %vm761_vm0, 0.0, %v768_v39  ;;  %v845_v58 = vsel %vm761_vm0, 0.0, %v771_v42  ;;  %v3063_v26 = vsel %vm761_vm0, 0.0, %v774_v48 }
  0xb4   : > { %v3049_v12 = vsel %vm761_vm0, %v801_v41, %v802_v5  ;;  %v842_v20 = vsel %vm761_vm0, 0.0, %v3950_v24  ;;  %v3059_v45 = vsel %vm761_vm0, %v804_v60, %v805_v6  ;;  %v3066_v5 = vsel %vm761_vm0, 0.0, %v777_v37 }
  0xb5   : > { %3949 = vst [vmem:[#allocation24_spill] sm:$0xff] %v3049_v12  ;;  %v843_v8 = vsel %vm761_vm0, 0.0, %v3951_v18  ;;  %3952 = vst [vmem:[#allocation25_spill] sm:$0xff] %v3059_v45  ;;  %v3069_v21 = vsel %vm761_vm0, 0.0, %v780_v33  ;;  %v3072_v35 = vsel %vm761_vm0, 0.0, %v783_v23  ;;  %v891_v24 = vrot.slane %v2878_v16, 1 }
  0xb6   : > { %v892_v39 = vrot.slane %v2881_v28, 1  ;;  %v3077_v6 = vsel %vm761_vm0, 0.0, %v786_v17  ;;  %v894_v42 = vrot.slane %v2884_v43, 1  ;;  %v895_v48 = vrot.slane %v2887_v53, 1  ;;  %v3953_v18 = vld [vmem:[#allocation80_spill] sm:$0xff] }
  0xb7   : > { %v3082_v37 = vsel %vm761_vm0, 0.0, %v789_v36  ;;  %v3085_v33 = vsel %vm761_vm0, 0.0, %v792_v51  ;;  %v3088_v23 = vsel %vm761_vm0, 0.0, %v795_v55  ;;  %v3091_v16 = vsel %vm761_vm0, 0.0, %v798_v38  ;;  %v3954_v51 = vld [vmem:[#allocation13_spill] sm:$0xff] }
  0xb8   : > { %v897_v28 = vrot.slane %v2890_v59, 1  ;;  %v898_v17 = vrot.slane %v2893_v29, 1  ;;  %v900_v43 = vrot.slane %v2896_v54, 1  ;;  %v901_v53 = vrot.slane %v2899_v50, 1  ;;  %v3955_v55 = vld [vmem:[#allocation81_spill] sm:$0xff] }
  0xb9   : > { %v893_v36 = vsel %vm890_vm1, %v891_v24, %v892_v39  ;;  %v987_v49 = vadd.f32 %v842_v20, %v3953_v18  ;;  %v988_v32 = vadd.f32 %v2981_v22, %v3954_v51  ;;  %v989_v45 = vadd.f32 %v843_v8, %v3955_v55  ;;  %v3958_v8 = vld [vmem:[#allocation82_spill] sm:$0xff] }
  0xba   : > { %v896_v38 = vsel %vm890_vm1, %v894_v42, %v895_v48  ;;  %v903_v12 = vrot.slane %v2902_v52, 1  ;;  %v904_v59 = vrot.slane %v2905_v4, 1  ;;  %v971_v29 = vsel %vm890_vm1, %v892_v39, 0.0  ;;  %v3959_v42 = vld [vmem:[#allocation83_spill] sm:$0xff] }
  0xbb   : > { %v3107_v54 = vsel %vm761_vm0, 0.0, %v801_v41  ;;  %v3110_v50 = vsel %vm761_vm0, 0.0, %v804_v60  ;;  %v3956_v20 = vrot.slane %v3947_v14, 7  ;;  %v990_v24 = vadd.f32 %v2993_v27, %v3958_v8  ;;  %v3960_v14 = vld [vmem:[#allocation84_spill] sm:$0xff] }
  0xbc   : > { %v899_v52 = vsel %vm890_vm1, %v897_v28, %v898_v17  ;;  %v902_v4 = vsel %vm890_vm1, %v900_v43, %v901_v53  ;;  %v906_v39 = vrot.slane %v2908_v2, 1  ;;  %v972_v41 = vsel %vm890_vm1, %v895_v48, 0.0 }
  0xbd   : > { %v3115_v22 = vsel %vm761_vm0, 0.0, %v3956_v20  ;;  %v991_v18 = vadd.f32 %v844_v19, %v3959_v42  ;;  %v1019_v60 = vadd.f32 %v987_v49, %v893_v36  ;;  %v1020_v51 = vadd.f32 %v988_v32, %v971_v29 }
  0xbe   : > { %3957 = vst [vmem:[#allocation26_spill] sm:$0xff] %v3115_v22  ;;  %v3124_v55 = vadd.f32 %v989_v45, %v896_v38  ;;  %v905_v20 = vsel %vm890_vm1, %v903_v12, %v904_v59  ;;  %v907_v22 = vrot.slane %v2911_v11, 1  ;;  %v992_v27 = vadd.f32 %v2996_v31, %v3960_v14  ;;  %v3961_v31 = vld [vmem:[#allocation85_spill] sm:$0xff] }
  0xbf   : > { %v3130_v28 = vadd.f32 %v990_v24, %v972_v41  ;;  %v1052_v2 = vsel %vm1051_vm2, %v1019_v60, 0.0  ;;  %v1053_v48 = vsel %vm1051_vm2, %v1020_v51, 0.0  ;;  %v909_v32 = vrot.slane %v2914_v57, 1  ;;  %v3962_v24 = vld [vmem:[#allocation86_spill] sm:$0xff] }
  0xc0   : > { %v1055_v49 = vsel %vm1051_vm2, %v3124_v55, 0.0  ;;  %v910_v45 = vrot.slane %v2917_v63, 1  ;;  %v973_v12 = vsel %vm890_vm1, %v898_v17, 0.0  ;;  %v1054_v11 = vadd.f32 %v1053_v48, %v1052_v2  ;;  %v3963_v2 = vld [vmem:[#allocation87_spill] sm:$0xff] }
  0xc1   : > { %v912_v19 = vrot.slane %v2920_v15, 1  ;;  %v993_v14 = vadd.f32 %v845_v58, %v3961_v31  ;;  %v1023_v43 = vadd.f32 %v991_v18, %v899_v52  ;;  %v1057_v36 = vsel %vm1051_vm2, %v3130_v28, 0.0 }
  0xc2   : > { %v908_v38 = vsel %vm890_vm1, %v906_v39, %v907_v22  ;;  %v913_v29 = vrot.slane %v2923_v13, 1  ;;  %v915_v8 = vrot.slane %v2926_v0, 1  ;;  %v1056_v57 = vadd.f32 %v1055_v49, %v1054_v11 }
  0xc3   : > { %v916_v63 = vrot.slane %v2929_v1, 1  ;;  %v994_v17 = vadd.f32 %v3001_v56, %v3962_v24  ;;  %v1024_v41 = vadd.f32 %v992_v27, %v973_v12  ;;  %v1059_v15 = vsel %vm1051_vm2, %v1023_v43, 0.0 }
  0xc4   : > { %v918_v58 = vrot.slane %v2932_v46, 1  ;;  %v3547_v52 = vrot.slane %v2935_v3, 1  ;;  %v974_v42 = vsel %vm890_vm1, %v901_v53, 0.0  ;;  %v1058_v39 = vadd.f32 %v1057_v36, %v1056_v57 }
  0xc5   : > { %v911_v18 = vsel %vm890_vm1, %v909_v32, %v910_v45  ;;  %v995_v0 = vadd.f32 %v3063_v26, %v3963_v2  ;;  %v1025_v48 = vadd.f32 %v993_v14, %v902_v4  ;;  %v1061_v49 = vsel %vm1051_vm2, %v1024_v41, 0.0  ;;  %v3964_v32 = vld [vmem:[#allocation88_spill] sm:$0xff] }
  0xc6   : > { %v914_v56 = vsel %vm890_vm1, %v912_v19, %v913_v29  ;;  %v921_v27 = vrot.slane %v2938_v10, 1  ;;  %v3546_v46 = vrot.slane %v2941_v34, 1  ;;  %v1060_v12 = vadd.f32 %v1059_v15, %v1058_v39 }
  0xc7   : > { %v3165_v53 = vsel %vm890_vm1, %v915_v8, %v916_v63  ;;  %v996_v26 = vadd.f32 %v3004_v40, %v3964_v32  ;;  %v1026_v4 = vadd.f32 %v994_v17, %v974_v42  ;;  %v1063_v11 = vsel %vm1051_vm2, %v1025_v48, 0.0  ;;  %v3965_v8 = vld [vmem:[#allocation89_spill] sm:$0xff]  ;;  %v3966_v42 = vld [vmem:[#allocation90_spill] sm:$0xff] }
  0xc8   : > { %v3173_v19 = vsel %vm890_vm1, %v918_v58, %v3547_v52  ;;  %v924_v10 = vrot.slane %v2944_v25, 1  ;;  %v975_v31 = vsel %vm890_vm1, %v904_v59, 0.0  ;;  %v1062_v14 = vadd.f32 %v1061_v49, %v1060_v12  ;;  %v3972_v59 = vld [vmem:[#allocation11_spill] sm:$0xff] }
  0xc9   : > { %v925_v36 = vrot.slane %v2947_v44, 1  ;;  %v997_v57 = vadd.f32 %v3066_v5, %v3965_v8  ;;  %v1027_v24 = vadd.f32 %v995_v0, %v905_v20  ;;  %v1065_v40 = vsel %vm1051_vm2, %v1026_v4, 0.0 }
  0xca   : > { %v3184_v17 = vsel %vm890_vm1, %v921_v27, %v3546_v46  ;;  %v927_v15 = vrot.slane %v2950_v9, 1  ;;  %v928_v25 = vrot.slane %v2953_v62, 1  ;;  %v1064_v58 = vadd.f32 %v1063_v11, %v1062_v14  ;;  %v3967_v27 = vld [vmem:[#allocation91_spill] sm:$0xff] }
  0xcb   : > { %v998_v39 = vadd.f32 %v3013_v30, %v3966_v42  ;;  %v1028_v2 = vadd.f32 %v996_v26, %v975_v31  ;;  %v1067_v5 = vsel %vm1051_vm2, %v1027_v24, 0.0  ;;  %v976_v20 = vsel %vm890_vm1, %v907_v22, 0.0  ;;  %v3968_v14 = vld [vmem:[#allocation107_spill] sm:$0xff]  ;;  %v3969_v31 = vld [vmem:[#allocation92_spill] sm:$0xff] }
  0xcc   : > { %v1066_v0 = vadd.f32 %v1065_v40, %v1064_v58  ;;  %v1121_v49 = vmul.f32 %v1019_v60, %v1019_v60  ;;  %v1122_v12 = vmul.f32 %v1020_v51, %v1020_v51  ;;  %v999_v32 = vadd.f32 %v3069_v21, %v3967_v27  ;;  %v3970_v60 = vld [vmem:[#allocation19_spill] sm:$0xff]  ;;  %v3971_v40 = vld [vmem:[#allocation93_spill] sm:$0xff] }
  0xcd   : > { %v1029_v8 = vadd.f32 %v997_v57, %v908_v38  ;;  %v1069_v46 = vsel %vm1051_vm2, %v1028_v2, 0.0  ;;  %v1123_v11 = vmul.f32 %v3124_v55, %v3124_v55  ;;  %v977_v30 = vsel %vm890_vm1, %v910_v45, 0.0  ;;  %v3996_v62 = vld [vmem:[#allocation75_spill] sm:$0xff] }
  0xce   : > { %v1068_v26 = vadd.f32 %v1067_v5, %v1066_v0  ;;  %v1124_v22 = vmul.f32 %v3130_v28, %v3130_v28  ;;  %v1000_v51 = vadd.f32 %v3970_v60, %v3969_v31  ;;  %v1001_v21 = vadd.f32 %v3072_v35, %v3971_v40  ;;  %v3975_v40 = vld [vmem:[#allocation95_spill] sm:$0xff] }
  0xcf   : > { %v1030_v38 = vadd.f32 %v998_v39, %v976_v20  ;;  %v1071_v57 = vsel %vm1051_vm2, %v1029_v8, 0.0  ;;  %v1125_v42 = vmul.f32 %v1023_v43, %v1023_v43  ;;  %v1153_v55 = vsel %vm1051_vm2, %v1121_v49, 0.0  ;;  %v3973_v39 = vld [vmem:[#allocation94_spill] sm:$0xff]  ;;  %v3974_v20 = vld [vmem:[#allocation20_spill] sm:$0xff] }
  0xd0   : > { %v1070_v58 = vadd.f32 %v1069_v46, %v1068_v26  ;;  %v1154_v27 = vsel %vm1051_vm2, %v1122_v12, 0.0  ;;  %v1031_v45 = vadd.f32 %v999_v32, %v911_v18  ;;  %v1156_v28 = vsel %vm1051_vm2, %v1123_v11, 0.0 }
  0xd1   : > { %v1073_v5 = vsel %vm1051_vm2, %v1030_v38, 0.0  ;;  %v1155_v0 = vadd.f32 %v1154_v27, %v1153_v55  ;;  %v933_v31 = vrot.slane %v3972_v59, 1  ;;  %v1126_v52 = vmul.f32 %v1024_v41, %v1024_v41  ;;  %v3977_v27 = vld [vmem:[#allocation21_spill] sm:$0xff] }
  0xd2   : > { %v1072_v60 = vadd.f32 %v1071_v57, %v1070_v58  ;;  %v1158_v35 = vsel %vm1051_vm2, %v1124_v22, 0.0  ;;  %v1002_v46 = vadd.f32 %v3974_v20, %v3973_v39  ;;  %v1032_v43 = vadd.f32 %v1000_v51, %v977_v30  ;;  %v3979_v20 = vld [vmem:[#allocation98_spill] sm:$0xff] }
  0xd3   : > { %v1075_v49 = vsel %vm1051_vm2, %v1031_v45, 0.0  ;;  %v1157_v26 = vadd.f32 %v1156_v28, %v1155_v0  ;;  %v978_v18 = vsel %vm890_vm1, %v913_v29, 0.0  ;;  %v1127_v32 = vmul.f32 %v1025_v48, %v1025_v48  ;;  %v3976_v29 = vld [vmem:[#allocation96_spill] sm:$0xff] }
  0xd4   : > { %v1074_v12 = vadd.f32 %v1073_v5, %v1072_v60  ;;  %v1160_v11 = vsel %vm1051_vm2, %v1125_v42, 0.0  ;;  %v1003_v41 = vadd.f32 %v3077_v6, %v3975_v40  ;;  %v1033_v57 = vadd.f32 %v1001_v21, %v914_v56 }
  0xd5   : > { %v1077_v22 = vsel %vm1051_vm2, %v1032_v43, 0.0  ;;  %v1159_v58 = vadd.f32 %v1158_v35, %v1157_v26  ;;  %v926_v30 = vsel %vm890_vm1, %v924_v10, %v925_v36  ;;  %v1128_v55 = vmul.f32 %v1026_v4, %v1026_v4  ;;  %v3978_v10 = vld [vmem:[#allocation97_spill] sm:$0xff] }
  0xd6   : > { %v1076_v51 = vadd.f32 %v1075_v49, %v1074_v12  ;;  %v1162_v13 = vsel %vm1051_vm2, %v1126_v52, 0.0  ;;  %v1004_v48 = vadd.f32 %v3977_v27, %v3976_v29  ;;  %v1034_v5 = vadd.f32 %v1002_v46, %v978_v18 }
  0xd7   : > { %v1079_v42 = vsel %vm1051_vm2, %v1033_v57, 0.0  ;;  %v1161_v0 = vadd.f32 %v1160_v11, %v1159_v58  ;;  %v979_v6 = vsel %vm890_vm1, %v916_v63, 0.0  ;;  %v1129_v21 = vmul.f32 %v1027_v24, %v1027_v24 }
  0xd8   : > { %v1078_v56 = vadd.f32 %v1077_v22, %v1076_v51  ;;  %v1164_v28 = vsel %vm1051_vm2, %v1127_v32, 0.0  ;;  %v1005_v4 = vadd.f32 %v3082_v37, %v3978_v10  ;;  %v1035_v52 = vadd.f32 %v1003_v41, %v3165_v53  ;;  %v3982_v41 = vld [vmem:[#allocation16_spill] sm:$0xff] }
  0xd9   : > { %v1081_v60 = vsel %vm1051_vm2, %v1034_v5, 0.0  ;;  %v1163_v35 = vadd.f32 %v1162_v13, %v1161_v0  ;;  %v929_v1 = vsel %vm890_vm1, %v927_v15, %v928_v25  ;;  %v1130_v63 = vmul.f32 %v1028_v2, %v1028_v2  ;;  %v3981_v15 = vld [vmem:[#allocation99_spill] sm:$0xff]  ;;  %v3984_v13 = vld [vmem:[#allocation22_spill] sm:$0xff] }
  0xda   : > { %v1080_v39 = vadd.f32 %v1079_v42, %v1078_v56  ;;  %v1166_v24 = vsel %vm1051_vm2, %v1128_v55, 0.0  ;;  %v1006_v46 = vadd.f32 %v3033_v7, %v3979_v20  ;;  %v1036_v49 = vadd.f32 %v1004_v48, %v979_v6  ;;  %v3983_v55 = vld [vmem:[#allocation100_spill] sm:$0xff]  ;;  %v3986_v56 = vld [vmem:[#allocation101_spill] sm:$0xff] }
  0xdb   : > { %v1083_v37 = vsel %vm1051_vm2, %v1035_v52, 0.0  ;;  %v1165_v53 = vadd.f32 %v1164_v28, %v1163_v35  ;;  %v3980_v26 = vrot.slane %v2935_v3, 1  ;;  %v1131_v32 = vmul.f32 %v1029_v8, %v1029_v8 }
  0xdc   : > { %v1082_v12 = vadd.f32 %v1081_v60, %v1080_v39  ;;  %v1168_v9 = vsel %vm1051_vm2, %v1129_v21, 0.0  ;;  %v1007_v2 = vadd.f32 %v3085_v33, %v3981_v15  ;;  %v1037_v11 = vadd.f32 %v1005_v4, %v3173_v19  ;;  %v3987_v4 = vld [vmem:[#allocation17_spill] sm:$0xff] }
  0xdd   : > { %v980_v18 = vsel %vm890_vm1, %v3980_v26, 0.0  ;;  %v1085_v40 = vsel %vm1051_vm2, %v1036_v49, 0.0  ;;  %v1167_v7 = vadd.f32 %v1166_v24, %v1165_v53  ;;  %v934_v22 = vrot.slane %v3982_v41, 1  ;;  %v3989_v26 = vld [vmem:[#allocation103_spill] sm:$0xff] }
  0xde   : > { %v1084_v58 = vadd.f32 %v1083_v37, %v1082_v12  ;;  %v1132_v51 = vmul.f32 %v1030_v38, %v1030_v38  ;;  %v1170_v3 = vsel %vm1051_vm2, %v1130_v63, 0.0  ;;  %v1008_v29 = vadd.f32 %v3984_v13, %v3983_v55  ;;  %v3988_v63 = vld [vmem:[#allocation102_spill] sm:$0xff]  ;;  %v3994_v13 = vld [vmem:[#allocation9_spill] sm:$0xff] }
  0xdf   : > { %v1038_v8 = vadd.f32 %v1006_v46, %v980_v18  ;;  %v1087_v27 = vsel %vm1051_vm2, %v1037_v11, 0.0  ;;  %v1169_v48 = vadd.f32 %v1168_v9, %v1167_v7  ;;  %v3985_v33 = vrot.slane %v2941_v34, 1 }
  0xe0   : > { %v1086_v42 = vadd.f32 %v1085_v40, %v1084_v58  ;;  %v1133_v0 = vmul.f32 %v1031_v45, %v1031_v45  ;;  %v1172_v6 = vsel %vm1051_vm2, %v1131_v32, 0.0  ;;  %v1009_v38 = vadd.f32 %v3088_v23, %v3986_v56  ;;  %v3993_v40 = vld [vmem:[#allocation23_spill] sm:$0xff]  ;;  %v3997_v56 = vld [vmem:[#allocation24_spill] sm:$0xff] }
  0xe1   : > { %v981_v19 = vsel %vm890_vm1, %v3985_v33, 0.0  ;;  %v1039_v21 = vadd.f32 %v1007_v2, %v3184_v17  ;;  %v1089_v28 = vsel %vm1051_vm2, %v1038_v8, 0.0  ;;  %v1171_v10 = vadd.f32 %v1170_v3, %v1169_v48  ;;  %v3995_v33 = vld [vmem:[#allocation18_spill] sm:$0xff] }
  0xe2   : > { %v936_v60 = vrot.slane %v3987_v4, 1  ;;  %v1088_v35 = vadd.f32 %v1087_v27, %v1086_v42  ;;  %v1134_v39 = vmul.f32 %v1032_v43, %v1032_v43  ;;  %v1174_v34 = vsel %vm1051_vm2, %v1132_v51, 0.0 }
  0xe3   : > { %v1010_v24 = vadd.f32 %v3039_v61, %v3988_v63  ;;  %v1040_v45 = vadd.f32 %v1008_v29, %v981_v19  ;;  %v1091_v20 = vsel %vm1051_vm2, %v1039_v21, 0.0  ;;  %v1173_v46 = vadd.f32 %v1172_v6, %v1171_v10 }
  0xe4   : > { %v982_v23 = vsel %vm890_vm1, %v925_v36, 0.0  ;;  %v1090_v17 = vadd.f32 %v1089_v28, %v1088_v35  ;;  %v1135_v37 = vmul.f32 %v1033_v57, %v1033_v57  ;;  %v1176_v53 = vsel %vm1051_vm2, %v1133_v0, 0.0  ;;  %v3992_v57 = vld [vmem:[#allocation12_spill] sm:$0xff] }
  0xe5   : > { %v1011_v43 = vadd.f32 %v3091_v16, %v3989_v26  ;;  %v1041_v18 = vadd.f32 %v1009_v38, %v926_v30  ;;  %v1093_v12 = vsel %vm1051_vm2, %v1040_v45, 0.0  ;;  %v1175_v32 = vadd.f32 %v1174_v34, %v1173_v46  ;;  %v3999_v34 = vld [vmem:[#allocation76_spill] sm:$0xff] }
  0xe6   : > { %v3990_v61 = vrot.slane %v3968_v14, 1  ;;  %v3991_v9 = vrot.slane %v2956_v47, 1  ;;  %v1092_v44 = vadd.f32 %v1091_v20, %v1090_v17  ;;  %v1136_v2 = vmul.f32 %v1034_v5, %v1034_v5 }
  0xe7   : > { %v1178_v36 = vsel %vm1051_vm2, %v1134_v39, 0.0  ;;  %v1012_v7 = vadd.f32 %v3993_v40, %v3992_v57  ;;  %v1042_v58 = vadd.f32 %v1010_v24, %v982_v23  ;;  %v1095_v16 = vsel %vm1051_vm2, %v1041_v18, 0.0  ;;  %v4006_v40 = vld [vmem:[#allocation78_spill] sm:$0xff] }
  0xe8   : > { %v932_v15 = vsel %vm890_vm1, %v3991_v9, %v3990_v61  ;;  %v1177_v30 = vadd.f32 %v1176_v53, %v1175_v32  ;;  %v983_v51 = vsel %vm890_vm1, %v928_v25, 0.0  ;;  %v1094_v3 = vadd.f32 %v1093_v12, %v1092_v44 }
  0xe9   : > { %v1137_v55 = vmul.f32 %v1035_v52, %v1035_v52  ;;  %v1180_v47 = vsel %vm1051_vm2, %v1135_v37, 0.0  ;;  %v1013_v5 = vadd.f32 %v3107_v54, %v3994_v13  ;;  %v1043_v29 = vadd.f32 %v1011_v43, %v929_v1  ;;  %v4001_v37 = vld [vmem:[#allocation25_spill] sm:$0xff] }
  0xea   : > { %v1097_v27 = vsel %vm1051_vm2, %v1042_v58, 0.0  ;;  %v1179_v48 = vadd.f32 %v1178_v36, %v1177_v30  ;;  %v937_v19 = vrot.slane %v3995_v33, 1  ;;  %v1096_v42 = vadd.f32 %v1095_v16, %v1094_v3 }
  0xeb   : > { %v1138_v0 = vmul.f32 %v1036_v49, %v1036_v49  ;;  %v1182_v6 = vsel %vm1051_vm2, %v1136_v2, 0.0  ;;  %v1014_v25 = vadd.f32 %v3997_v56, %v3996_v62  ;;  %v1044_v38 = vadd.f32 %v1012_v7, %v983_v51  ;;  %v4007_v7 = vld [vmem:[#allocation26_spill] sm:$0xff] }
  0xec   : > { %v1099_v52 = vsel %vm1051_vm2, %v1043_v29, 0.0  ;;  %v1181_v28 = vadd.f32 %v1180_v47, %v1179_v48  ;;  %v3998_v10 = vmov %v3990_v61  ;;  %v1098_v1 = vadd.f32 %v1097_v27, %v1096_v42  ;;  %v4008_v27 = vld [vmem:[#allocation79_spill] sm:$0xff] }
  0xed   : > { %v984_v54 = vsel %vm890_vm1, %v3998_v10, 0.0  ;;  %v1139_v35 = vmul.f32 %v1037_v11, %v1037_v11  ;;  %v1184_v39 = vsel %vm1051_vm2, %v1137_v55, 0.0  ;;  %v1015_v49 = vadd.f32 %v3110_v50, %v3999_v34  ;;  %v4000_v11 = vld [vmem:[#allocation77_spill] sm:$0xff] }
  0xee   : > { %v1045_v63 = vadd.f32 %v1013_v5, %v932_v15  ;;  %v1101_v24 = vsel %vm1051_vm2, %v1044_v38, 0.0  ;;  %v1183_v20 = vadd.f32 %v1182_v6, %v1181_v28  ;;  %v935_v46 = vsel %vm890_vm1, %v933_v31, %v934_v22  ;;  %v4002_v31 = vld [vmem:[#allocation46_spill] sm:$0xff] }
  0xef   : > { %v1100_v14 = vadd.f32 %v1099_v52, %v1098_v1  ;;  %v1140_v23 = vmul.f32 %v1038_v8, %v1038_v8  ;;  %v1186_v17 = vsel %vm1051_vm2, %v1138_v0, 0.0  ;;  %v1016_v53 = vadd.f32 %v4001_v37, %v4000_v11  ;;  %v4004_v8 = vld [vmem:[#allocation45_spill] sm:$0xff] }
  0xf0   : > { %v1046_v26 = vadd.f32 %v1014_v25, %v984_v54  ;;  %v1103_v50 = vsel %vm1051_vm2, %v1045_v63, 0.0  ;;  %v1185_v43 = vadd.f32 %v1184_v39, %v1183_v20  ;;  %v985_v12 = vsel %vm890_vm1, %v934_v22, 0.0 }
  0xf1   : > { %v1102_v32 = vadd.f32 %v1101_v24, %v1100_v14  ;;  %v1141_v61 = vmul.f32 %v1039_v21, %v1039_v21  ;;  %v1188_v59 = vsel %vm1051_vm2, %v1139_v35, 0.0  ;;  %v4003_v9 = vrot.slane %v4002_v31, 7 }
  0xf2   : > { %v4005_v15 = vrot.slane %v4004_v8, 7  ;;  %v1047_v2 = vadd.f32 %v1015_v49, %v935_v46  ;;  %v1105_v36 = vsel %vm1051_vm2, %v1046_v26, 0.0  ;;  %v1187_v57 = vadd.f32 %v1186_v17, %v1185_v43 }
  0xf3   : > { %v1017_v16 = vadd.f32 %v4007_v7, %v4006_v40  ;;  %v1104_v41 = vadd.f32 %v1103_v50, %v1102_v32  ;;  %v1142_v30 = vmul.f32 %v1040_v45, %v1040_v45  ;;  %v1190_v22 = vsel %vm1051_vm2, %v1140_v23, 0.0 }
  0xf4   : > { %v809_v44 = vsel %vm761_vm0, %v4005_v15, %v4003_v9  ;;  %v938_v21 = vsel %vm890_vm1, %v936_v60, %v937_v19  ;;  %v1048_v51 = vadd.f32 %v1016_v53, %v985_v12  ;;  %v1107_v3 = vsel %vm1051_vm2, %v1047_v2, 0.0 }
  0xf5   : > { %v1189_v55 = vadd.f32 %v1188_v59, %v1187_v57  ;;  %v1106_v47 = vadd.f32 %v1105_v36, %v1104_v41  ;;  %v1143_v13 = vmul.f32 %v1041_v18, %v1041_v18  ;;  %v1192_v5 = vsel %vm1051_vm2, %v1141_v61, 0.0 }
  0xf6   : > { %v1018_v48 = vadd.f32 %v809_v44, %v4008_v27  ;;  %v1109_v33 = vsel %vm1051_vm2, %v1048_v51, 0.0  ;;  %v1049_v45 = vadd.f32 %v1017_v16, %v938_v21  ;;  %v1144_v6 = vmul.f32 %v1042_v58, %v1042_v58 }
  0xf7   : > { %v1191_v42 = vadd.f32 %v1190_v22, %v1189_v55  ;;  %v1108_v0 = vadd.f32 %v1107_v3, %v1106_v47  ;;  %v1194_v4 = vsel %vm1051_vm2, %v1142_v30, 0.0  ;;  %v986_v60 = vsel %vm890_vm1, %v937_v19, 0.0 }
  0xf8   : > { %v1111_v25 = vsel %vm1051_vm2, %v1049_v45, 0.0  ;;  %v1145_v52 = vmul.f32 %v1043_v29, %v1043_v29  ;;  %v1196_v18 = vsel %vm1051_vm2, %v1143_v13, 0.0  ;;  %v1050_v10 = vadd.f32 %v1018_v48, %v986_v60 }
  0xf9   : > { %v1193_v62 = vadd.f32 %v1192_v5, %v1191_v42  ;;  %v1110_v56 = vadd.f32 %v1109_v33, %v1108_v0  ;;  %v1146_v54 = vmul.f32 %v1044_v38, %v1044_v38  ;;  %v1198_v1 = vsel %vm1051_vm2, %v1144_v6, 0.0 }
  0xfa   : > { %v1113_v58 = vsel %vm1051_vm2, %v1050_v10, 0.0  ;;  %v1147_v34 = vmul.f32 %v1045_v63, %v1045_v63  ;;  %v1200_v49 = vsel %vm1051_vm2, %v1145_v52, 0.0  ;;  %v1148_v24 = vmul.f32 %v1046_v26, %v1046_v26 }
  0xfb   : > { %v1195_v28 = vadd.f32 %v1194_v4, %v1193_v62  ;;  %v1112_v35 = vadd.f32 %v1111_v25, %v1110_v56  ;;  %v1202_v20 = vsel %vm1051_vm2, %v1146_v54, 0.0  ;;  %v1149_v14 = vmul.f32 %v1047_v2, %v1047_v2 }
  0xfc   : > { %v1204_v23 = vsel %vm1051_vm2, %v1147_v34, 0.0  ;;  %v1150_v38 = vmul.f32 %v1048_v51, %v1048_v51  ;;  %v1206_v11 = vsel %vm1051_vm2, %v1148_v24, 0.0  ;;  %v1151_v50 = vmul.f32 %v1049_v45, %v1049_v45 }
  0xfd   : > { %v1197_v39 = vadd.f32 %v1196_v18, %v1195_v28  ;;  %v1114_v46 = vadd.f32 %v1113_v58, %v1112_v35  ;;  %v1208_v63 = vsel %vm1051_vm2, %v1149_v14, 0.0  ;;  %v1152_v12 = vmul.f32 %v1050_v10, %v1050_v10 }
  0xfe   : > { %v1210_v26 = vsel %vm1051_vm2, %v1150_v38, 0.0  ;;  %v1212_v59 = vsel %vm1051_vm2, %v1151_v50, 0.0 }
  0xff   : > { %v1199_v19 = vadd.f32 %v1198_v1, %v1197_v39  ;;  %v1115_v37 = vrot.slane %v1114_v46, 4  ;;  %v1214_v9 = vsel %vm1051_vm2, %v1152_v12, 0.0 }
 0x101   : > { %v1201_v29 = vadd.f32 %v1200_v49, %v1199_v19  ;;  %v1116_v32 = vadd.f32 %v1115_v37, %v1114_v46 }
 0x103   : > { %v1203_v17 = vadd.f32 %v1202_v20, %v1201_v29  ;;  %v1117_v8 = vrot.slane %v1116_v32, 2 }
 0x105   : > { %v1205_v53 = vadd.f32 %v1204_v23, %v1203_v17  ;;  %v1118_v2 = vadd.f32 %v1117_v8, %v1116_v32 }
 0x107   : > { %v1207_v43 = vadd.f32 %v1206_v11, %v1205_v53  ;;  %v1119_v40 = vrot.slane %v1118_v2, 1 }
 0x109   : > { %v1209_v61 = vadd.f32 %v1208_v63, %v1207_v43  ;;  %v1120_v41 = vadd.f32 %v1119_v40, %v1118_v2 }
 0x10b   : > { %v1211_v31 = vadd.f32 %v1210_v26, %v1209_v61 }
 0x10d   : > { %v1213_v15 = vadd.f32 %v1212_v59, %v1211_v31 }
 0x10f   : > { %v1215_v44 = vadd.f32 %v1214_v9, %v1213_v15 }
 0x111   : > { %v1216_v36 = vrot.slane %v1215_v44, 4 }
 0x113   : > { %v1217_v57 = vadd.f32 %v1216_v36, %v1215_v44 }
 0x115   : > { %v1218_v7 = vrot.slane %v1217_v57, 2 }
 0x117   : > { %v1219_v16 = vadd.f32 %v1218_v7, %v1217_v57 }
 0x119   : > { %v1220_v30 = vrot.slane %v1219_v16, 1 }
 0x11b   : > { %v1221_v22 = vadd.f32 %v1220_v30, %v1219_v16 }
 0x11d   : > { %v1222_v21 = vsel %vm761_vm0, %v1120_v41, %v1221_v22 }
 0x11e   : > { %1224 = vst.msk [vmem:[%s171_s15] sm:$0x3] %vm1223_vm3, %v1222_v21 }
 0x11f   : > { %1413 = shalt.err (!%p1410_p5)
}
 0x120   : > { %s1414_s28 = scalar_lea.hbm %s3356_s23, 32  ;;  %s1418_s3 = scalar_lea.hbm %s3406_s2, 64 }
 0x121   : > { %p1415_p6 = scmp.ne.s32.totalorder %s3356_s23, %s1414_s28  ;;  %p1419_p10 = scmp.lt.u32.totalorder %s3356_s23, %s3406_s2 }
 0x122   : > { %p1420_p11 = scmp.lt.u32.totalorder %s1418_s3, %s1414_s28  ;;  %p1422_p13 = scmp.lt.u32.totalorder %s1414_s28, %s3356_s23 }
 0x123   : > { %p1416_p7 = pnand %p1415_p6, %p1536_p4 }
 0x124   : > { %p1421_p12 = por %p1420_p11, %p1419_p10 }
 0x125   : > { %p1417_p9 = pneg %p1416_p7 }
 0x126   : > { %p1423_p0 = por %p1422_p13, %p1421_p12 }
 0x128   : > { %p1424_p1 = pnand %p1423_p0, %p1417_p9 }
 0x12a   : > { %1427 = shalt.err (!%p1424_p1)
}
 0x12b   : > { %1345 = dma.vmem_to_hbm [thread:$0]  (%p1536_p4), %s3358_s16, 32, %s3356_s23, %s1226_s24  }
 0x12c PF: > { %p1351_p2 = scmp.ge.s32.totalorder %s1478_s14, 2  ;;  %s1253_s6 = sand.u32 1, %s1458_s9  }
 0x12d   : > { %s1254_s7 = scalar_lea.sflag [#allocation3], %s1253_s6 }
 0x12e   : > { %p1348_p3 = pnand %p1351_p2, %p1543_p8 }
 0x130   : > { %1453 = dma.done.wait (!%p1348_p3), %s1254_s7, 32  }
 0x131   : > { %1455 = vsyncadd (!%p1348_p3), %s1254_s7, 4294967264  ;;  %s15_s14 = sadd.s32 1, %s1478_s14   ;;  %s4009_s9 = smov %s1462_s10 }
 0x132   : > { %p12_p5 = scmp.ge.s32.totalorder %s15_s14, 4   ;;  %s4010_s10 = smov %s1466_s11 }
 0x133   : > { %s4011_s11 = smov %s1549_s22  ;;  %s4012_s12 = smov %s1474_s13 }
 0x134   : > { %s4013_s13 = smov %s4015_s17  ;;  %14 = sbr.rel (!%p12_p5) target bundleno = 4 (0x4), region = 66 }
 0x13b   :  { %1259 = vsyncpa [#allocation3], 1 }
 0x13c   :  { %1261 = vsyncpa [#allocation3 + $0x1], 1 }

</bundles_post_ra>
